<compile_context>
chip_gen: v6e
topology: v6e:2x2x1
jax: 0.10.0
libtpu: 0.0.40
codegen_flags: <defaults>
</compile_context>

<pallas_src>
import math

import jax
import jax.numpy as jnp
from jax import lax
from jax.experimental import pallas as pl
from jax.experimental.pallas import tpu as pltpu

# Module hyper-parameters (d_model = n_head * d_k = 128 keeps every block
# lane-dense).
D_MODEL = 128
N_HEAD = 4
D_K = 32
D_V = 32
LN_EPS = 1e-5          # PyTorch nn.LayerNorm default
NEG_INF = -1.0e9       # value used by masked_fill_ in the reference module


def _mha_kernel(q_ref, k_ref, v_ref, bias_ref,
                wq_ref, bq_ref, wk_ref, bk_ref, wv_ref, bv_ref,
                wo_ref, bo_ref, gamma_ref, beta_ref,
                out_ref, ctx_ref):
    bt, s, d = q_ref.shape
    m = bt * s
    scale = 1.0 / math.sqrt(D_K)

    # Residual stays f32; MXU operands are bf16 with f32 accumulation.
    q_res = q_ref[...].reshape(m, d)                     # (Bt*S, D) f32
    q_in = q_res.astype(jnp.bfloat16)
    k_in = k_ref[...].reshape(m, d).astype(jnp.bfloat16)
    v_in = v_ref[...].reshape(m, d).astype(jnp.bfloat16)

    # Batch-folded QKV projections: (Bt*S, 128) @ (128, 128) bf16 matmuls.
    q = jnp.dot(q_in, wq_ref[...], preferred_element_type=jnp.float32) + bq_ref[...]
    k = jnp.dot(k_in, wk_ref[...], preferred_element_type=jnp.float32) + bk_ref[...]
    v = jnp.dot(v_in, wv_ref[...], preferred_element_type=jnp.float32) + bv_ref[...]

    # Fold 1/sqrt(d_k) into q once (instead of scaling (S,S) scores per head).
    qb = (q * scale).astype(jnp.bfloat16)
    kb = k.astype(jnp.bfloat16)
    vb = v.astype(jnp.bfloat16)

    # Per (batch-in-tile, head) attention. Per-head contexts land in lane
    # slices of the VMEM scratch, so the output projection is one K=128 matmul.
    for b in range(bt):
        bias_b = bias_ref[b].astype(jnp.float32)         # (S, S): 0 / -1e9
        r0, r1 = b * s, (b + 1) * s
        q_b = qb[r0:r1, :]
        k_b = kb[r0:r1, :]
        v_b = vb[r0:r1, :]
        for h in range(N_HEAD):
            qh = q_b[:, h * D_K:(h + 1) * D_K]           # (S, d_k) bf16
            kh = k_b[:, h * D_K:(h + 1) * D_K]
            vh = v_b[:, h * D_V:(h + 1) * D_V]

            # scores = (q/sqrt(d_k)) @ k^T + mask_bias   (f32 accumulation)
            scores = lax.dot_general(
                qh, kh, (((1,), (1,)), ((), ())),
                preferred_element_type=jnp.float32) + bias_b

            # Numerically stable softmax along the key axis (f32 VPU/EUP).
            mx = jnp.max(scores, axis=-1, keepdims=True)
            e = jnp.exp(scores - mx)
            ssum = jnp.sum(e, axis=-1, keepdims=True)
            attn = (e * pl.reciprocal(ssum, approx=True)).astype(jnp.bfloat16)

            ctx_ref[r0:r1, h * D_V:(h + 1) * D_V] = jnp.dot(
                attn, vh, preferred_element_type=jnp.float32)

    # Output projection: single (Bt*S, 128) @ (128, 128) bf16 matmul.
    out = jnp.dot(ctx_ref[...].astype(jnp.bfloat16), wo_ref[...],
                  preferred_element_type=jnp.float32) + bo_ref[...]

    # Residual + LayerNorm (biased variance, like PyTorch), all f32.
    res = out + q_res
    mean = jnp.mean(res, axis=-1, keepdims=True)
    c = res - mean
    var = jnp.mean(c * c, axis=-1, keepdims=True)
    y = c * lax.rsqrt(var + LN_EPS) * gamma_ref[...] + beta_ref[...]
    out_ref[...] = y.reshape(bt, s, d).astype(out_ref.dtype)


@jax.jit
def multi_head_attention(Q, K, V, attn_bias_bf16,
                         wq, bq, wk, bk, wv, bv, wo, bo, gamma, beta):
    """Q/K/V: (B, S, d_model) f32; attn_bias_bf16: (B, S, S) bf16 additive
    bias (0 where unmasked, -1e9 where masked).

    Weights are stored in (in_features, out_features) layout; biases and
    LayerNorm params are (1, out_features). Returns (B, S, d_model) f32.
    """
    b, s, d = Q.shape
    d_qk = wq.shape[1]
    d_vt = wv.shape[1]

    # Weights feed the MXU in bf16 (cast once here, resident in VMEM).
    wq_b = wq.astype(jnp.bfloat16)
    wk_b = wk.astype(jnp.bfloat16)
    wv_b = wv.astype(jnp.bfloat16)
    wo_b = wo.astype(jnp.bfloat16)

    # Fold as many batch elements as possible into each grid step so the
    # projection matmuls see M = Bt*S rows (bounded so (S,S) scores and
    # activations stay comfortably inside VMEM).
    bt = 1
    for cand in range(1, b + 1):
        if b % cand == 0 and cand * s <= 256:
            bt = cand

    grid_spec = pltpu.PrefetchScalarGridSpec(
        num_scalar_prefetch=0,
        grid=(b // bt,),
        in_specs=[
            # Per-batch-tile activation blocks (full sequence, lane-dense D).
            pl.BlockSpec((bt, s, d), lambda i: (i, 0, 0)),      # Q
            pl.BlockSpec((bt, s, d), lambda i: (i, 0, 0)),      # K
            pl.BlockSpec((bt, s, d), lambda i: (i, 0, 0)),      # V
            pl.BlockSpec((bt, s, s), lambda i: (i, 0, 0)),      # additive mask bias (bf16)
            # Parameters: full arrays, constant index_map -> VMEM-resident.
            pl.BlockSpec((d, d_qk), lambda i: (0, 0)),          # W_Q (bf16)
            pl.BlockSpec((1, d_qk), lambda i: (0, 0)),          # b_Q
            pl.BlockSpec((d, d_qk), lambda i: (0, 0)),          # W_K (bf16)
            pl.BlockSpec((1, d_qk), lambda i: (0, 0)),          # b_K
            pl.BlockSpec((d, d_vt), lambda i: (0, 0)),          # W_V (bf16)
            pl.BlockSpec((1, d_vt), lambda i: (0, 0)),          # b_V
            pl.BlockSpec((d_vt, d), lambda i: (0, 0)),          # W_O (bf16)
            pl.BlockSpec((1, d), lambda i: (0, 0)),             # b_O
            pl.BlockSpec((1, d), lambda i: (0, 0)),             # gamma
            pl.BlockSpec((1, d), lambda i: (0, 0)),             # beta
        ],
        out_specs=pl.BlockSpec((bt, s, d), lambda i: (i, 0, 0)),
        scratch_shapes=[pltpu.VMEM((bt * s, D_MODEL), jnp.float32)],  # context
    )

    return pl.pallas_call(
        _mha_kernel,
        out_shape=jax.ShapeDtypeStruct((b, s, d), jnp.float32),
        grid_spec=grid_spec,
        compiler_params=pltpu.CompilerParams(
            # Batch tiles are independent -> shard across TCs on v7x.
            dimension_semantics=("parallel",),
            # Above v5e's 16 MiB default; at/below v6e/v7x defaults.
            vmem_limit_bytes=32 * 1024 * 1024,
        ),
    )(Q, K, V, attn_bias_bf16,
      wq_b, bq, wk_b, bk, wv_b, bv, wo_b, bo, gamma, beta)


def _reference(Q, K, V, mask_bool, wq, bq, wk, bk, wv, bv, wo, bo, gamma, beta):
    """Pure-JAX mirror of the PyTorch forward pass (f32 throughout)."""
    b, s, _ = Q.shape
    q = (Q @ wq + bq).reshape(b, s, N_HEAD, D_K).transpose(0, 2, 1, 3)
    k = (K @ wk + bk).reshape(b, s, N_HEAD, D_K).transpose(0, 2, 1, 3)
    v = (V @ wv + bv).reshape(b, s, N_HEAD, D_V).transpose(0, 2, 1, 3)
    scores = jnp.einsum("bhqd,bhkd->bhqk", q, k) / jnp.sqrt(jnp.float32(D_K))
    scores = jnp.where(mask_bool[:, None, :, :], NEG_INF, scores)
    attn = jax.nn.softmax(scores, axis=-1)
    ctx = jnp.einsum("bhqk,bhkd->bhqd", attn, v)
    ctx = ctx.transpose(0, 2, 1, 3).reshape(b, s, N_HEAD * D_V)
    out = ctx @ wo + bo
    res = out + Q
    mean = jnp.mean(res, axis=-1, keepdims=True)
    var = jnp.mean((res - mean) ** 2, axis=-1, keepdims=True)
    return (res - mean) / jnp.sqrt(var + LN_EPS) * gamma + beta


if __name__ == "__main__":
    key = jax.random.PRNGKey(0)
    keys = jax.random.split(key, 12)

    B, S = 2, 8
    D_QK = N_HEAD * D_K
    D_VT = N_HEAD * D_V
    w_scale = 0.05

    # Deterministic parameter init (weights in (in, out) layout).
    wq = w_scale * jax.random.normal(keys[0], (D_MODEL, D_QK), jnp.float32)
    bq = w_scale * jax.random.normal(keys[1], (1, D_QK), jnp.float32)
    wk = w_scale * jax.random.normal(keys[2], (D_MODEL, D_QK), jnp.float32)
    bk = w_scale * jax.random.normal(keys[3], (1, D_QK), jnp.float32)
    wv = w_scale * jax.random.normal(keys[4], (D_MODEL, D_VT), jnp.float32)
    bv = w_scale * jax.random.normal(keys[5], (1, D_VT), jnp.float32)
    wo = w_scale * jax.random.normal(keys[6], (D_VT, D_MODEL), jnp.float32)
    bo = w_scale * jax.random.normal(keys[7], (1, D_MODEL), jnp.float32)
    gamma = jnp.ones((1, D_MODEL), jnp.float32)
    beta = jnp.zeros((1, D_MODEL), jnp.float32)

    # Inputs.
    Q = jax.random.normal(keys[8], (B, S, D_MODEL), jnp.float32)
    K = jax.random.normal(keys[9], (B, S, D_MODEL), jnp.float32)
    V = jax.random.normal(keys[10], (B, S, D_MODEL), jnp.float32)

    # Deterministic attention mask (mask out future positions), like the
    # boolean mask the PyTorch module consumes. The kernel takes it as a
    # precomputed bf16 additive bias (0 / -1e9) to avoid the f32 mask DMA
    # and the per-head compare+select.
    rows = jnp.arange(S)
    mask_bool = jnp.broadcast_to(rows[None, :] > rows[:, None], (B, S, S))
    mask_bias = jnp.where(mask_bool, jnp.float32(NEG_INF),
                          jnp.float32(0.0)).astype(jnp.bfloat16)

    out = multi_head_attention(Q, K, V, mask_bias,
                               wq, bq, wk, bk, wv, bv, wo, bo, gamma, beta)
    out = jax.block_until_ready(out)

    ref = _reference(Q, K, V, mask_bool,
                     wq, bq, wk, bk, wv, bv, wo, bo, gamma, beta)

    assert out.shape == (B, S, D_MODEL)
    # Kernel uses bf16 MXU operands with f32 accumulation; after LayerNorm the
    # values are O(1), so 1e-2 tolerance comfortably covers the quantization.
    assert jnp.allclose(out, ref, atol=1e-2, rtol=1e-2), "mismatch vs reference"

    print("KERNEL_OK")
</pallas_src>

<mosaic_0001>
module attributes {stable_mosaic.version = 11 : i64} {
  func.func @_mha_kernel(%arg0: i32, %arg1: memref<2x8x128xf32, #tpu.memory_space<vmem>>, %arg2: memref<2x8x128xf32, #tpu.memory_space<vmem>>, %arg3: memref<2x8x128xf32, #tpu.memory_space<vmem>>, %arg4: memref<2x8x8xbf16, #tpu.memory_space<vmem>>, %arg5: memref<128x128xbf16, #tpu.memory_space<vmem>>, %arg6: memref<1x128xf32, #tpu.memory_space<vmem>>, %arg7: memref<128x128xbf16, #tpu.memory_space<vmem>>, %arg8: memref<1x128xf32, #tpu.memory_space<vmem>>, %arg9: memref<128x128xbf16, #tpu.memory_space<vmem>>, %arg10: memref<1x128xf32, #tpu.memory_space<vmem>>, %arg11: memref<128x128xbf16, #tpu.memory_space<vmem>>, %arg12: memref<1x128xf32, #tpu.memory_space<vmem>>, %arg13: memref<1x128xf32, #tpu.memory_space<vmem>>, %arg14: memref<1x128xf32, #tpu.memory_space<vmem>>, %arg15: memref<2x8x128xf32, #tpu.memory_space<vmem>>, %arg16: memref<16x128xf32, #tpu.memory_space<vmem>>) attributes {dimension_semantics = [#tpu.dimension_semantics<parallel>], iteration_bounds = array<i64: 1>, scalar_prefetch = 0 : i64, scratch_operands = 1 : i64, tpu.core_type = #tpu.core_type<tc>, window_params = [{transform_indices = @transform_0, window_bounds = array<i64: 2, 8, 128>}, {transform_indices = @transform_1, window_bounds = array<i64: 2, 8, 128>}, {transform_indices = @transform_2, window_bounds = array<i64: 2, 8, 128>}, {transform_indices = @transform_3, window_bounds = array<i64: 2, 8, 8>}, {pipeline_mode = #tpu.pipeline_mode<synchronous>, transform_indices = @transform_4, window_bounds = array<i64: 128, 128>}, {pipeline_mode = #tpu.pipeline_mode<synchronous>, transform_indices = @transform_5, window_bounds = array<i64: 1, 128>}, {pipeline_mode = #tpu.pipeline_mode<synchronous>, transform_indices = @transform_6, window_bounds = array<i64: 128, 128>}, {pipeline_mode = #tpu.pipeline_mode<synchronous>, transform_indices = @transform_7, window_bounds = array<i64: 1, 128>}, {pipeline_mode = #tpu.pipeline_mode<synchronous>, transform_indices = @transform_8, window_bounds = array<i64: 128, 128>}, {pipeline_mode = #tpu.pipeline_mode<synchronous>, transform_indices = @transform_9, window_bounds = array<i64: 1, 128>}, {pipeline_mode = #tpu.pipeline_mode<synchronous>, transform_indices = @transform_10, window_bounds = array<i64: 128, 128>}, {pipeline_mode = #tpu.pipeline_mode<synchronous>, transform_indices = @transform_11, window_bounds = array<i64: 1, 128>}, {pipeline_mode = #tpu.pipeline_mode<synchronous>, transform_indices = @transform_12, window_bounds = array<i64: 1, 128>}, {pipeline_mode = #tpu.pipeline_mode<synchronous>, transform_indices = @transform_13, window_bounds = array<i64: 1, 128>}, {transform_indices = @transform_14, window_bounds = array<i64: 2, 8, 128>}]} {
    %c0 = arith.constant 0 : index
    %c0_0 = arith.constant 0 : index
    %c0_1 = arith.constant 0 : index
    %0 = vector.load %arg1[%c0, %c0_0, %c0_1] : memref<2x8x128xf32, #tpu.memory_space<vmem>>, vector<2x8x128xf32>
    %1 = vector.shape_cast %0 : vector<2x8x128xf32> to vector<16x128xf32>
    %2 = arith.truncf %1 : vector<16x128xf32> to vector<16x128xbf16>
    %c0_2 = arith.constant 0 : index
    %c0_3 = arith.constant 0 : index
    %c0_4 = arith.constant 0 : index
    %3 = vector.load %arg2[%c0_2, %c0_3, %c0_4] : memref<2x8x128xf32, #tpu.memory_space<vmem>>, vector<2x8x128xf32>
    %4 = vector.shape_cast %3 : vector<2x8x128xf32> to vector<16x128xf32>
    %5 = arith.truncf %4 : vector<16x128xf32> to vector<16x128xbf16>
    %c0_5 = arith.constant 0 : index
    %c0_6 = arith.constant 0 : index
    %c0_7 = arith.constant 0 : index
    %6 = vector.load %arg3[%c0_5, %c0_6, %c0_7] : memref<2x8x128xf32, #tpu.memory_space<vmem>>, vector<2x8x128xf32>
    %7 = vector.shape_cast %6 : vector<2x8x128xf32> to vector<16x128xf32>
    %8 = arith.truncf %7 : vector<16x128xf32> to vector<16x128xbf16>
    %c0_8 = arith.constant 0 : index
    %c0_9 = arith.constant 0 : index
    %9 = vector.load %arg5[%c0_8, %c0_9] : memref<128x128xbf16, #tpu.memory_space<vmem>>, vector<128x128xbf16>
    %cst = arith.constant dense<0.000000e+00> : vector<16x128xf32>
    %10 = tpu.matmul %2, %9, %cst {dimension_numbers = #tpu.dot_dimension_numbers<[1], [0], [0], [1], [0, 0, 1, 1], [], []>} : vector<16x128xbf16>, vector<128x128xbf16>, vector<16x128xf32> -> vector<16x128xf32>
    %c0_10 = arith.constant 0 : index
    %c0_11 = arith.constant 0 : index
    %11 = vector.load %arg6[%c0_10, %c0_11] : memref<1x128xf32, #tpu.memory_space<vmem>>, vector<1x128xf32>
    %12 = vector.broadcast %11 : vector<1x128xf32> to vector<16x128xf32>
    %13 = arith.addf %10, %12 : vector<16x128xf32>
    %c0_12 = arith.constant 0 : index
    %c0_13 = arith.constant 0 : index
    %14 = vector.load %arg7[%c0_12, %c0_13] : memref<128x128xbf16, #tpu.memory_space<vmem>>, vector<128x128xbf16>
    %cst_14 = arith.constant dense<0.000000e+00> : vector<16x128xf32>
    %15 = tpu.matmul %5, %14, %cst_14 {dimension_numbers = #tpu.dot_dimension_numbers<[1], [0], [0], [1], [0, 0, 1, 1], [], []>} : vector<16x128xbf16>, vector<128x128xbf16>, vector<16x128xf32> -> vector<16x128xf32>
    %c0_15 = arith.constant 0 : index
    %c0_16 = arith.constant 0 : index
    %16 = vector.load %arg8[%c0_15, %c0_16] : memref<1x128xf32, #tpu.memory_space<vmem>>, vector<1x128xf32>
    %17 = vector.broadcast %16 : vector<1x128xf32> to vector<16x128xf32>
    %18 = arith.addf %15, %17 : vector<16x128xf32>
    %c0_17 = arith.constant 0 : index
    %c0_18 = arith.constant 0 : index
    %19 = vector.load %arg9[%c0_17, %c0_18] : memref<128x128xbf16, #tpu.memory_space<vmem>>, vector<128x128xbf16>
    %cst_19 = arith.constant dense<0.000000e+00> : vector<16x128xf32>
    %20 = tpu.matmul %8, %19, %cst_19 {dimension_numbers = #tpu.dot_dimension_numbers<[1], [0], [0], [1], [0, 0, 1, 1], [], []>} : vector<16x128xbf16>, vector<128x128xbf16>, vector<16x128xf32> -> vector<16x128xf32>
    %c0_20 = arith.constant 0 : index
    %c0_21 = arith.constant 0 : index
    %21 = vector.load %arg10[%c0_20, %c0_21] : memref<1x128xf32, #tpu.memory_space<vmem>>, vector<1x128xf32>
    %22 = vector.broadcast %21 : vector<1x128xf32> to vector<16x128xf32>
    %23 = arith.addf %20, %22 : vector<16x128xf32>
    %cst_22 = arith.constant 0.176776692 : f32
    %24 = vector.broadcast %cst_22 : f32 to vector<16x128xf32>
    %25 = arith.mulf %13, %24 : vector<16x128xf32>
    %26 = arith.truncf %25 : vector<16x128xf32> to vector<16x128xbf16>
    %27 = arith.truncf %18 : vector<16x128xf32> to vector<16x128xbf16>
    %28 = arith.truncf %23 : vector<16x128xf32> to vector<16x128xbf16>
    %c0_23 = arith.constant 0 : index
    %c0_24 = arith.constant 0 : index
    %c0_25 = arith.constant 0 : index
    %29 = vector.load %arg4[%c0_23, %c0_24, %c0_25] : memref<2x8x8xbf16, #tpu.memory_space<vmem>>, vector<1x8x8xbf16>
    %30 = vector.shape_cast %29 : vector<1x8x8xbf16> to vector<8x8xbf16>
    %31 = arith.extf %30 : vector<8x8xbf16> to vector<8x8xf32>
    %32 = vector.extract_strided_slice %26 {offsets = [0, 0], sizes = [8, 128], strides = [1, 1]} : vector<16x128xbf16> to vector<8x128xbf16>
    %33 = vector.extract_strided_slice %27 {offsets = [0, 0], sizes = [8, 128], strides = [1, 1]} : vector<16x128xbf16> to vector<8x128xbf16>
    %34 = vector.extract_strided_slice %28 {offsets = [0, 0], sizes = [8, 128], strides = [1, 1]} : vector<16x128xbf16> to vector<8x128xbf16>
    %35 = vector.extract_strided_slice %32 {offsets = [0, 0], sizes = [8, 32], strides = [1, 1]} : vector<8x128xbf16> to vector<8x32xbf16>
    %36 = vector.extract_strided_slice %33 {offsets = [0, 0], sizes = [8, 32], strides = [1, 1]} : vector<8x128xbf16> to vector<8x32xbf16>
    %37 = vector.extract_strided_slice %34 {offsets = [0, 0], sizes = [8, 32], strides = [1, 1]} : vector<8x128xbf16> to vector<8x32xbf16>
    %cst_26 = arith.constant dense<0.000000e+00> : vector<8x8xf32>
    %38 = tpu.matmul %35, %36, %cst_26 {dimension_numbers = #tpu.dot_dimension_numbers<[1], [1], [0], [0], [0, 0, 1, 0], [], []>} : vector<8x32xbf16>, vector<8x32xbf16>, vector<8x8xf32> -> vector<8x8xf32>
    %39 = arith.addf %38, %31 : vector<8x8xf32>
    %cst_27 = arith.constant dense<0xFF800000> : vector<8xf32>
    %40 = vector.multi_reduction <maximumf>, %39, %cst_27 [1] : vector<8x8xf32> to vector<8xf32>
    %41 = vector.shape_cast %40 : vector<8xf32> to vector<8x1xf32>
    %42 = vector.broadcast %41 : vector<8x1xf32> to vector<8x8xf32>
    %43 = arith.subf %39, %42 : vector<8x8xf32>
    %44 = math.exp %43 : vector<8x8xf32>
    %cst_28 = arith.constant dense<0.000000e+00> : vector<8xf32>
    %45 = vector.multi_reduction <add>, %44, %cst_28 [1] : vector<8x8xf32> to vector<8xf32>
    %46 = vector.shape_cast %45 : vector<8xf32> to vector<8x1xf32>
    %47 = tpu.reciprocal %46 {approx = true} : vector<8x1xf32> -> vector<8x1xf32>
    %48 = vector.broadcast %47 : vector<8x1xf32> to vector<8x8xf32>
    %49 = arith.mulf %44, %48 : vector<8x8xf32>
    %50 = arith.truncf %49 : vector<8x8xf32> to vector<8x8xbf16>
    %cst_29 = arith.constant dense<0.000000e+00> : vector<8x32xf32>
    %51 = tpu.matmul %50, %37, %cst_29 {dimension_numbers = #tpu.dot_dimension_numbers<[1], [0], [0], [1], [0, 0, 1, 1], [], []>} : vector<8x8xbf16>, vector<8x32xbf16>, vector<8x32xf32> -> vector<8x32xf32>
    %c0_30 = arith.constant 0 : index
    %c0_31 = arith.constant 0 : index
    %52 = vector.load %arg16[%c0_30, %c0_31] : memref<16x128xf32, #tpu.memory_space<vmem>>, vector<8x32xf32>
    tpu.vector_store %arg16[%c0_30, %c0_31], %51 {strides = array<i32>} : memref<16x128xf32, #tpu.memory_space<vmem>>, vector<8x32xf32>,
    %53 = vector.extract_strided_slice %32 {offsets = [0, 32], sizes = [8, 32], strides = [1, 1]} : vector<8x128xbf16> to vector<8x32xbf16>
    %54 = vector.extract_strided_slice %33 {offsets = [0, 32], sizes = [8, 32], strides = [1, 1]} : vector<8x128xbf16> to vector<8x32xbf16>
    %55 = vector.extract_strided_slice %34 {offsets = [0, 32], sizes = [8, 32], strides = [1, 1]} : vector<8x128xbf16> to vector<8x32xbf16>
    %cst_32 = arith.constant dense<0.000000e+00> : vector<8x8xf32>
    %56 = tpu.matmul %53, %54, %cst_32 {dimension_numbers = #tpu.dot_dimension_numbers<[1], [1], [0], [0], [0, 0, 1, 0], [], []>} : vector<8x32xbf16>, vector<8x32xbf16>, vector<8x8xf32> -> vector<8x8xf32>
    %57 = arith.addf %56, %31 : vector<8x8xf32>
    %cst_33 = arith.constant dense<0xFF800000> : vector<8xf32>
    %58 = vector.multi_reduction <maximumf>, %57, %cst_33 [1] : vector<8x8xf32> to vector<8xf32>
    %59 = vector.shape_cast %58 : vector<8xf32> to vector<8x1xf32>
    %60 = vector.broadcast %59 : vector<8x1xf32> to vector<8x8xf32>
    %61 = arith.subf %57, %60 : vector<8x8xf32>
    %62 = math.exp %61 : vector<8x8xf32>
    %cst_34 = arith.constant dense<0.000000e+00> : vector<8xf32>
    %63 = vector.multi_reduction <add>, %62, %cst_34 [1] : vector<8x8xf32> to vector<8xf32>
    %64 = vector.shape_cast %63 : vector<8xf32> to vector<8x1xf32>
    %65 = tpu.reciprocal %64 {approx = true} : vector<8x1xf32> -> vector<8x1xf32>
    %66 = vector.broadcast %65 : vector<8x1xf32> to vector<8x8xf32>
    %67 = arith.mulf %62, %66 : vector<8x8xf32>
    %68 = arith.truncf %67 : vector<8x8xf32> to vector<8x8xbf16>
    %cst_35 = arith.constant dense<0.000000e+00> : vector<8x32xf32>
    %69 = tpu.matmul %68, %55, %cst_35 {dimension_numbers = #tpu.dot_dimension_numbers<[1], [0], [0], [1], [0, 0, 1, 1], [], []>} : vector<8x8xbf16>, vector<8x32xbf16>, vector<8x32xf32> -> vector<8x32xf32>
    %c0_36 = arith.constant 0 : index
    %c32 = arith.constant 32 : index
    %70 = vector.load %arg16[%c0_36, %c32] : memref<16x128xf32, #tpu.memory_space<vmem>>, vector<8x32xf32>
    tpu.vector_store %arg16[%c0_36, %c32], %69 {strides = array<i32>} : memref<16x128xf32, #tpu.memory_space<vmem>>, vector<8x32xf32>,
    %71 = vector.extract_strided_slice %32 {offsets = [0, 64], sizes = [8, 32], strides = [1, 1]} : vector<8x128xbf16> to vector<8x32xbf16>
    %72 = vector.extract_strided_slice %33 {offsets = [0, 64], sizes = [8, 32], strides = [1, 1]} : vector<8x128xbf16> to vector<8x32xbf16>
    %73 = vector.extract_strided_slice %34 {offsets = [0, 64], sizes = [8, 32], strides = [1, 1]} : vector<8x128xbf16> to vector<8x32xbf16>
    %cst_37 = arith.constant dense<0.000000e+00> : vector<8x8xf32>
    %74 = tpu.matmul %71, %72, %cst_37 {dimension_numbers = #tpu.dot_dimension_numbers<[1], [1], [0], [0], [0, 0, 1, 0], [], []>} : vector<8x32xbf16>, vector<8x32xbf16>, vector<8x8xf32> -> vector<8x8xf32>
    %75 = arith.addf %74, %31 : vector<8x8xf32>
    %cst_38 = arith.constant dense<0xFF800000> : vector<8xf32>
    %76 = vector.multi_reduction <maximumf>, %75, %cst_38 [1] : vector<8x8xf32> to vector<8xf32>
    %77 = vector.shape_cast %76 : vector<8xf32> to vector<8x1xf32>
    %78 = vector.broadcast %77 : vector<8x1xf32> to vector<8x8xf32>
    %79 = arith.subf %75, %78 : vector<8x8xf32>
    %80 = math.exp %79 : vector<8x8xf32>
    %cst_39 = arith.constant dense<0.000000e+00> : vector<8xf32>
    %81 = vector.multi_reduction <add>, %80, %cst_39 [1] : vector<8x8xf32> to vector<8xf32>
    %82 = vector.shape_cast %81 : vector<8xf32> to vector<8x1xf32>
    %83 = tpu.reciprocal %82 {approx = true} : vector<8x1xf32> -> vector<8x1xf32>
    %84 = vector.broadcast %83 : vector<8x1xf32> to vector<8x8xf32>
    %85 = arith.mulf %80, %84 : vector<8x8xf32>
    %86 = arith.truncf %85 : vector<8x8xf32> to vector<8x8xbf16>
    %cst_40 = arith.constant dense<0.000000e+00> : vector<8x32xf32>
    %87 = tpu.matmul %86, %73, %cst_40 {dimension_numbers = #tpu.dot_dimension_numbers<[1], [0], [0], [1], [0, 0, 1, 1], [], []>} : vector<8x8xbf16>, vector<8x32xbf16>, vector<8x32xf32> -> vector<8x32xf32>
    %c0_41 = arith.constant 0 : index
    %c64 = arith.constant 64 : index
    %88 = vector.load %arg16[%c0_41, %c64] : memref<16x128xf32, #tpu.memory_space<vmem>>, vector<8x32xf32>
    tpu.vector_store %arg16[%c0_41, %c64], %87 {strides = array<i32>} : memref<16x128xf32, #tpu.memory_space<vmem>>, vector<8x32xf32>,
    %89 = vector.extract_strided_slice %32 {offsets = [0, 96], sizes = [8, 32], strides = [1, 1]} : vector<8x128xbf16> to vector<8x32xbf16>
    %90 = vector.extract_strided_slice %33 {offsets = [0, 96], sizes = [8, 32], strides = [1, 1]} : vector<8x128xbf16> to vector<8x32xbf16>
    %91 = vector.extract_strided_slice %34 {offsets = [0, 96], sizes = [8, 32], strides = [1, 1]} : vector<8x128xbf16> to vector<8x32xbf16>
    %cst_42 = arith.constant dense<0.000000e+00> : vector<8x8xf32>
    %92 = tpu.matmul %89, %90, %cst_42 {dimension_numbers = #tpu.dot_dimension_numbers<[1], [1], [0], [0], [0, 0, 1, 0], [], []>} : vector<8x32xbf16>, vector<8x32xbf16>, vector<8x8xf32> -> vector<8x8xf32>
    %93 = arith.addf %92, %31 : vector<8x8xf32>
    %cst_43 = arith.constant dense<0xFF800000> : vector<8xf32>
    %94 = vector.multi_reduction <maximumf>, %93, %cst_43 [1] : vector<8x8xf32> to vector<8xf32>
    %95 = vector.shape_cast %94 : vector<8xf32> to vector<8x1xf32>
    %96 = vector.broadcast %95 : vector<8x1xf32> to vector<8x8xf32>
    %97 = arith.subf %93, %96 : vector<8x8xf32>
    %98 = math.exp %97 : vector<8x8xf32>
    %cst_44 = arith.constant dense<0.000000e+00> : vector<8xf32>
    %99 = vector.multi_reduction <add>, %98, %cst_44 [1] : vector<8x8xf32> to vector<8xf32>
    %100 = vector.shape_cast %99 : vector<8xf32> to vector<8x1xf32>
    %101 = tpu.reciprocal %100 {approx = true} : vector<8x1xf32> -> vector<8x1xf32>
    %102 = vector.broadcast %101 : vector<8x1xf32> to vector<8x8xf32>
    %103 = arith.mulf %98, %102 : vector<8x8xf32>
    %104 = arith.truncf %103 : vector<8x8xf32> to vector<8x8xbf16>
    %cst_45 = arith.constant dense<0.000000e+00> : vector<8x32xf32>
    %105 = tpu.matmul %104, %91, %cst_45 {dimension_numbers = #tpu.dot_dimension_numbers<[1], [0], [0], [1], [0, 0, 1, 1], [], []>} : vector<8x8xbf16>, vector<8x32xbf16>, vector<8x32xf32> -> vector<8x32xf32>
    %c0_46 = arith.constant 0 : index
    %c96 = arith.constant 96 : index
    %106 = vector.load %arg16[%c0_46, %c96] : memref<16x128xf32, #tpu.memory_space<vmem>>, vector<8x32xf32>
    tpu.vector_store %arg16[%c0_46, %c96], %105 {strides = array<i32>} : memref<16x128xf32, #tpu.memory_space<vmem>>, vector<8x32xf32>,
    %c1 = arith.constant 1 : index
    %c0_47 = arith.constant 0 : index
    %c0_48 = arith.constant 0 : index
    %107 = vector.load %arg4[%c1, %c0_47, %c0_48] : memref<2x8x8xbf16, #tpu.memory_space<vmem>>, vector<1x8x8xbf16>
    %108 = vector.shape_cast %107 : vector<1x8x8xbf16> to vector<8x8xbf16>
    %109 = arith.extf %108 : vector<8x8xbf16> to vector<8x8xf32>
    %110 = vector.extract_strided_slice %26 {offsets = [8, 0], sizes = [8, 128], strides = [1, 1]} : vector<16x128xbf16> to vector<8x128xbf16>
    %111 = vector.extract_strided_slice %27 {offsets = [8, 0], sizes = [8, 128], strides = [1, 1]} : vector<16x128xbf16> to vector<8x128xbf16>
    %112 = vector.extract_strided_slice %28 {offsets = [8, 0], sizes = [8, 128], strides = [1, 1]} : vector<16x128xbf16> to vector<8x128xbf16>
    %113 = vector.extract_strided_slice %110 {offsets = [0, 0], sizes = [8, 32], strides = [1, 1]} : vector<8x128xbf16> to vector<8x32xbf16>
    %114 = vector.extract_strided_slice %111 {offsets = [0, 0], sizes = [8, 32], strides = [1, 1]} : vector<8x128xbf16> to vector<8x32xbf16>
    %115 = vector.extract_strided_slice %112 {offsets = [0, 0], sizes = [8, 32], strides = [1, 1]} : vector<8x128xbf16> to vector<8x32xbf16>
    %cst_49 = arith.constant dense<0.000000e+00> : vector<8x8xf32>
    %116 = tpu.matmul %113, %114, %cst_49 {dimension_numbers = #tpu.dot_dimension_numbers<[1], [1], [0], [0], [0, 0, 1, 0], [], []>} : vector<8x32xbf16>, vector<8x32xbf16>, vector<8x8xf32> -> vector<8x8xf32>
    %117 = arith.addf %116, %109 : vector<8x8xf32>
    %cst_50 = arith.constant dense<0xFF800000> : vector<8xf32>
    %118 = vector.multi_reduction <maximumf>, %117, %cst_50 [1] : vector<8x8xf32> to vector<8xf32>
    %119 = vector.shape_cast %118 : vector<8xf32> to vector<8x1xf32>
    %120 = vector.broadcast %119 : vector<8x1xf32> to vector<8x8xf32>
    %121 = arith.subf %117, %120 : vector<8x8xf32>
    %122 = math.exp %121 : vector<8x8xf32>
    %cst_51 = arith.constant dense<0.000000e+00> : vector<8xf32>
    %123 = vector.multi_reduction <add>, %122, %cst_51 [1] : vector<8x8xf32> to vector<8xf32>
    %124 = vector.shape_cast %123 : vector<8xf32> to vector<8x1xf32>
    %125 = tpu.reciprocal %124 {approx = true} : vector<8x1xf32> -> vector<8x1xf32>
    %126 = vector.broadcast %125 : vector<8x1xf32> to vector<8x8xf32>
    %127 = arith.mulf %122, %126 : vector<8x8xf32>
    %128 = arith.truncf %127 : vector<8x8xf32> to vector<8x8xbf16>
    %cst_52 = arith.constant dense<0.000000e+00> : vector<8x32xf32>
    %129 = tpu.matmul %128, %115, %cst_52 {dimension_numbers = #tpu.dot_dimension_numbers<[1], [0], [0], [1], [0, 0, 1, 1], [], []>} : vector<8x8xbf16>, vector<8x32xbf16>, vector<8x32xf32> -> vector<8x32xf32>
    %c8 = arith.constant 8 : index
    %c0_53 = arith.constant 0 : index
    %130 = vector.load %arg16[%c8, %c0_53] : memref<16x128xf32, #tpu.memory_space<vmem>>, vector<8x32xf32>
    tpu.vector_store %arg16[%c8, %c0_53], %129 {strides = array<i32>} : memref<16x128xf32, #tpu.memory_space<vmem>>, vector<8x32xf32>,
    %131 = vector.extract_strided_slice %110 {offsets = [0, 32], sizes = [8, 32], strides = [1, 1]} : vector<8x128xbf16> to vector<8x32xbf16>
    %132 = vector.extract_strided_slice %111 {offsets = [0, 32], sizes = [8, 32], strides = [1, 1]} : vector<8x128xbf16> to vector<8x32xbf16>
    %133 = vector.extract_strided_slice %112 {offsets = [0, 32], sizes = [8, 32], strides = [1, 1]} : vector<8x128xbf16> to vector<8x32xbf16>
    %cst_54 = arith.constant dense<0.000000e+00> : vector<8x8xf32>
    %134 = tpu.matmul %131, %132, %cst_54 {dimension_numbers = #tpu.dot_dimension_numbers<[1], [1], [0], [0], [0, 0, 1, 0], [], []>} : vector<8x32xbf16>, vector<8x32xbf16>, vector<8x8xf32> -> vector<8x8xf32>
    %135 = arith.addf %134, %109 : vector<8x8xf32>
    %cst_55 = arith.constant dense<0xFF800000> : vector<8xf32>
    %136 = vector.multi_reduction <maximumf>, %135, %cst_55 [1] : vector<8x8xf32> to vector<8xf32>
    %137 = vector.shape_cast %136 : vector<8xf32> to vector<8x1xf32>
    %138 = vector.broadcast %137 : vector<8x1xf32> to vector<8x8xf32>
    %139 = arith.subf %135, %138 : vector<8x8xf32>
    %140 = math.exp %139 : vector<8x8xf32>
    %cst_56 = arith.constant dense<0.000000e+00> : vector<8xf32>
    %141 = vector.multi_reduction <add>, %140, %cst_56 [1] : vector<8x8xf32> to vector<8xf32>
    %142 = vector.shape_cast %141 : vector<8xf32> to vector<8x1xf32>
    %143 = tpu.reciprocal %142 {approx = true} : vector<8x1xf32> -> vector<8x1xf32>
    %144 = vector.broadcast %143 : vector<8x1xf32> to vector<8x8xf32>
    %145 = arith.mulf %140, %144 : vector<8x8xf32>
    %146 = arith.truncf %145 : vector<8x8xf32> to vector<8x8xbf16>
    %cst_57 = arith.constant dense<0.000000e+00> : vector<8x32xf32>
    %147 = tpu.matmul %146, %133, %cst_57 {dimension_numbers = #tpu.dot_dimension_numbers<[1], [0], [0], [1], [0, 0, 1, 1], [], []>} : vector<8x8xbf16>, vector<8x32xbf16>, vector<8x32xf32> -> vector<8x32xf32>
    %c8_58 = arith.constant 8 : index
    %c32_59 = arith.constant 32 : index
    %148 = vector.load %arg16[%c8_58, %c32_59] : memref<16x128xf32, #tpu.memory_space<vmem>>, vector<8x32xf32>
    tpu.vector_store %arg16[%c8_58, %c32_59], %147 {strides = array<i32>} : memref<16x128xf32, #tpu.memory_space<vmem>>, vector<8x32xf32>,
    %149 = vector.extract_strided_slice %110 {offsets = [0, 64], sizes = [8, 32], strides = [1, 1]} : vector<8x128xbf16> to vector<8x32xbf16>
    %150 = vector.extract_strided_slice %111 {offsets = [0, 64], sizes = [8, 32], strides = [1, 1]} : vector<8x128xbf16> to vector<8x32xbf16>
    %151 = vector.extract_strided_slice %112 {offsets = [0, 64], sizes = [8, 32], strides = [1, 1]} : vector<8x128xbf16> to vector<8x32xbf16>
    %cst_60 = arith.constant dense<0.000000e+00> : vector<8x8xf32>
    %152 = tpu.matmul %149, %150, %cst_60 {dimension_numbers = #tpu.dot_dimension_numbers<[1], [1], [0], [0], [0, 0, 1, 0], [], []>} : vector<8x32xbf16>, vector<8x32xbf16>, vector<8x8xf32> -> vector<8x8xf32>
    %153 = arith.addf %152, %109 : vector<8x8xf32>
    %cst_61 = arith.constant dense<0xFF800000> : vector<8xf32>
    %154 = vector.multi_reduction <maximumf>, %153, %cst_61 [1] : vector<8x8xf32> to vector<8xf32>
    %155 = vector.shape_cast %154 : vector<8xf32> to vector<8x1xf32>
    %156 = vector.broadcast %155 : vector<8x1xf32> to vector<8x8xf32>
    %157 = arith.subf %153, %156 : vector<8x8xf32>
    %158 = math.exp %157 : vector<8x8xf32>
    %cst_62 = arith.constant dense<0.000000e+00> : vector<8xf32>
    %159 = vector.multi_reduction <add>, %158, %cst_62 [1] : vector<8x8xf32> to vector<8xf32>
    %160 = vector.shape_cast %159 : vector<8xf32> to vector<8x1xf32>
    %161 = tpu.reciprocal %160 {approx = true} : vector<8x1xf32> -> vector<8x1xf32>
    %162 = vector.broadcast %161 : vector<8x1xf32> to vector<8x8xf32>
    %163 = arith.mulf %158, %162 : vector<8x8xf32>
    %164 = arith.truncf %163 : vector<8x8xf32> to vector<8x8xbf16>
    %cst_63 = arith.constant dense<0.000000e+00> : vector<8x32xf32>
    %165 = tpu.matmul %164, %151, %cst_63 {dimension_numbers = #tpu.dot_dimension_numbers<[1], [0], [0], [1], [0, 0, 1, 1], [], []>} : vector<8x8xbf16>, vector<8x32xbf16>, vector<8x32xf32> -> vector<8x32xf32>
    %c8_64 = arith.constant 8 : index
    %c64_65 = arith.constant 64 : index
    %166 = vector.load %arg16[%c8_64, %c64_65] : memref<16x128xf32, #tpu.memory_space<vmem>>, vector<8x32xf32>
    tpu.vector_store %arg16[%c8_64, %c64_65], %165 {strides = array<i32>} : memref<16x128xf32, #tpu.memory_space<vmem>>, vector<8x32xf32>,
    %167 = vector.extract_strided_slice %110 {offsets = [0, 96], sizes = [8, 32], strides = [1, 1]} : vector<8x128xbf16> to vector<8x32xbf16>
    %168 = vector.extract_strided_slice %111 {offsets = [0, 96], sizes = [8, 32], strides = [1, 1]} : vector<8x128xbf16> to vector<8x32xbf16>
    %169 = vector.extract_strided_slice %112 {offsets = [0, 96], sizes = [8, 32], strides = [1, 1]} : vector<8x128xbf16> to vector<8x32xbf16>
    %cst_66 = arith.constant dense<0.000000e+00> : vector<8x8xf32>
    %170 = tpu.matmul %167, %168, %cst_66 {dimension_numbers = #tpu.dot_dimension_numbers<[1], [1], [0], [0], [0, 0, 1, 0], [], []>} : vector<8x32xbf16>, vector<8x32xbf16>, vector<8x8xf32> -> vector<8x8xf32>
    %171 = arith.addf %170, %109 : vector<8x8xf32>
    %cst_67 = arith.constant dense<0xFF800000> : vector<8xf32>
    %172 = vector.multi_reduction <maximumf>, %171, %cst_67 [1] : vector<8x8xf32> to vector<8xf32>
    %173 = vector.shape_cast %172 : vector<8xf32> to vector<8x1xf32>
    %174 = vector.broadcast %173 : vector<8x1xf32> to vector<8x8xf32>
    %175 = arith.subf %171, %174 : vector<8x8xf32>
    %176 = math.exp %175 : vector<8x8xf32>
    %cst_68 = arith.constant dense<0.000000e+00> : vector<8xf32>
    %177 = vector.multi_reduction <add>, %176, %cst_68 [1] : vector<8x8xf32> to vector<8xf32>
    %178 = vector.shape_cast %177 : vector<8xf32> to vector<8x1xf32>
    %179 = tpu.reciprocal %178 {approx = true} : vector<8x1xf32> -> vector<8x1xf32>
    %180 = vector.broadcast %179 : vector<8x1xf32> to vector<8x8xf32>
    %181 = arith.mulf %176, %180 : vector<8x8xf32>
    %182 = arith.truncf %181 : vector<8x8xf32> to vector<8x8xbf16>
    %cst_69 = arith.constant dense<0.000000e+00> : vector<8x32xf32>
    %183 = tpu.matmul %182, %169, %cst_69 {dimension_numbers = #tpu.dot_dimension_numbers<[1], [0], [0], [1], [0, 0, 1, 1], [], []>} : vector<8x8xbf16>, vector<8x32xbf16>, vector<8x32xf32> -> vector<8x32xf32>
    %c8_70 = arith.constant 8 : index
    %c96_71 = arith.constant 96 : index
    %184 = vector.load %arg16[%c8_70, %c96_71] : memref<16x128xf32, #tpu.memory_space<vmem>>, vector<8x32xf32>
    tpu.vector_store %arg16[%c8_70, %c96_71], %183 {strides = array<i32>} : memref<16x128xf32, #tpu.memory_space<vmem>>, vector<8x32xf32>,
    %c0_72 = arith.constant 0 : index
    %c0_73 = arith.constant 0 : index
    %185 = vector.load %arg16[%c0_72, %c0_73] : memref<16x128xf32, #tpu.memory_space<vmem>>, vector<16x128xf32>
    %186 = arith.truncf %185 : vector<16x128xf32> to vector<16x128xbf16>
    %c0_74 = arith.constant 0 : index
    %c0_75 = arith.constant 0 : index
    %187 = vector.load %arg11[%c0_74, %c0_75] : memref<128x128xbf16, #tpu.memory_space<vmem>>, vector<128x128xbf16>
    %cst_76 = arith.constant dense<0.000000e+00> : vector<16x128xf32>
    %188 = tpu.matmul %186, %187, %cst_76 {dimension_numbers = #tpu.dot_dimension_numbers<[1], [0], [0], [1], [0, 0, 1, 1], [], []>} : vector<16x128xbf16>, vector<128x128xbf16>, vector<16x128xf32> -> vector<16x128xf32>
    %c0_77 = arith.constant 0 : index
    %c0_78 = arith.constant 0 : index
    %189 = vector.load %arg12[%c0_77, %c0_78] : memref<1x128xf32, #tpu.memory_space<vmem>>, vector<1x128xf32>
    %190 = vector.broadcast %189 : vector<1x128xf32> to vector<16x128xf32>
    %191 = arith.addf %188, %190 : vector<16x128xf32>
    %192 = arith.addf %191, %1 : vector<16x128xf32>
    %cst_79 = arith.constant dense<0.000000e+00> : vector<16xf32>
    %193 = vector.multi_reduction <add>, %192, %cst_79 [1] : vector<16x128xf32> to vector<16xf32>
    %194 = vector.shape_cast %193 : vector<16xf32> to vector<16x1xf32>
    %cst_80 = arith.constant 1.280000e+02 : f32
    %195 = vector.broadcast %cst_80 : f32 to vector<16x1xf32>
    %196 = arith.divf %194, %195 : vector<16x1xf32>
    %197 = vector.broadcast %196 : vector<16x1xf32> to vector<16x128xf32>
    %198 = arith.subf %192, %197 : vector<16x128xf32>
    %199 = arith.mulf %198, %198 : vector<16x128xf32>
    %cst_81 = arith.constant dense<0.000000e+00> : vector<16xf32>
    %200 = vector.multi_reduction <add>, %199, %cst_81 [1] : vector<16x128xf32> to vector<16xf32>
    %201 = vector.shape_cast %200 : vector<16xf32> to vector<16x1xf32>
    %cst_82 = arith.constant 1.280000e+02 : f32
    %202 = vector.broadcast %cst_82 : f32 to vector<16x1xf32>
    %203 = arith.divf %201, %202 : vector<16x1xf32>
    %cst_83 = arith.constant 9.99999974E-6 : f32
    %204 = vector.broadcast %cst_83 : f32 to vector<16x1xf32>
    %205 = arith.addf %203, %204 : vector<16x1xf32>
    %206 = math.rsqrt %205 : vector<16x1xf32>
    %207 = vector.broadcast %206 : vector<16x1xf32> to vector<16x128xf32>
    %208 = arith.mulf %198, %207 : vector<16x128xf32>
    %c0_84 = arith.constant 0 : index
    %c0_85 = arith.constant 0 : index
    %209 = vector.load %arg13[%c0_84, %c0_85] : memref<1x128xf32, #tpu.memory_space<vmem>>, vector<1x128xf32>
    %210 = vector.broadcast %209 : vector<1x128xf32> to vector<16x128xf32>
    %211 = arith.mulf %208, %210 : vector<16x128xf32>
    %c0_86 = arith.constant 0 : index
    %c0_87 = arith.constant 0 : index
    %212 = vector.load %arg14[%c0_86, %c0_87] : memref<1x128xf32, #tpu.memory_space<vmem>>, vector<1x128xf32>
    %213 = vector.broadcast %212 : vector<1x128xf32> to vector<16x128xf32>
    %214 = arith.addf %211, %213 : vector<16x128xf32>
    %215 = vector.shape_cast %214 : vector<16x128xf32> to vector<2x8x128xf32>
    %c0_88 = arith.constant 0 : index
    %c0_89 = arith.constant 0 : index
    %c0_90 = arith.constant 0 : index
    %216 = vector.load %arg15[%c0_88, %c0_89, %c0_90] : memref<2x8x128xf32, #tpu.memory_space<vmem>>, vector<2x8x128xf32>
    tpu.vector_store %arg15[%c0_88, %c0_89, %c0_90], %215 {strides = array<i32>} : memref<2x8x128xf32, #tpu.memory_space<vmem>>, vector<2x8x128xf32>,
    return
  }
  func.func @transform_0(%arg0: i32) -> (i32, i32, i32) {
    %c0_i32 = arith.constant 0 : i32
    %c0_i32_0 = arith.constant 0 : i32
    %c0_i32_1 = arith.constant 0 : i32
    return %arg0, %c0_i32, %c0_i32_0 : i32, i32, i32
  }
  func.func @transform_1(%arg0: i32) -> (i32, i32, i32) {
    %c0_i32 = arith.constant 0 : i32
    %c0_i32_0 = arith.constant 0 : i32
    %c0_i32_1 = arith.constant 0 : i32
    return %arg0, %c0_i32, %c0_i32_0 : i32, i32, i32
  }
  func.func @transform_2(%arg0: i32) -> (i32, i32, i32) {
    %c0_i32 = arith.constant 0 : i32
    %c0_i32_0 = arith.constant 0 : i32
    %c0_i32_1 = arith.constant 0 : i32
    return %arg0, %c0_i32, %c0_i32_0 : i32, i32, i32
  }
  func.func @transform_3(%arg0: i32) -> (i32, i32, i32) {
    %c0_i32 = arith.constant 0 : i32
    %c0_i32_0 = arith.constant 0 : i32
    %c0_i32_1 = arith.constant 0 : i32
    return %arg0, %c0_i32, %c0_i32_0 : i32, i32, i32
  }
  func.func @transform_4(%arg0: i32) -> (i32, i32) {
    %c0_i32 = arith.constant 0 : i32
    %c0_i32_0 = arith.constant 0 : i32
    %c0_i32_1 = arith.constant 0 : i32
    return %c0_i32, %c0_i32_0 : i32, i32
  }
  func.func @transform_5(%arg0: i32) -> (i32, i32) {
    %c0_i32 = arith.constant 0 : i32
    %c0_i32_0 = arith.constant 0 : i32
    %c0_i32_1 = arith.constant 0 : i32
    return %c0_i32, %c0_i32_0 : i32, i32
  }
  func.func @transform_6(%arg0: i32) -> (i32, i32) {
    %c0_i32 = arith.constant 0 : i32
    %c0_i32_0 = arith.constant 0 : i32
    %c0_i32_1 = arith.constant 0 : i32
    return %c0_i32, %c0_i32_0 : i32, i32
  }
  func.func @transform_7(%arg0: i32) -> (i32, i32) {
    %c0_i32 = arith.constant 0 : i32
    %c0_i32_0 = arith.constant 0 : i32
    %c0_i32_1 = arith.constant 0 : i32
    return %c0_i32, %c0_i32_0 : i32, i32
  }
  func.func @transform_8(%arg0: i32) -> (i32, i32) {
    %c0_i32 = arith.constant 0 : i32
    %c0_i32_0 = arith.constant 0 : i32
    %c0_i32_1 = arith.constant 0 : i32
    return %c0_i32, %c0_i32_0 : i32, i32
  }
  func.func @transform_9(%arg0: i32) -> (i32, i32) {
    %c0_i32 = arith.constant 0 : i32
    %c0_i32_0 = arith.constant 0 : i32
    %c0_i32_1 = arith.constant 0 : i32
    return %c0_i32, %c0_i32_0 : i32, i32
  }
  func.func @transform_10(%arg0: i32) -> (i32, i32) {
    %c0_i32 = arith.constant 0 : i32
    %c0_i32_0 = arith.constant 0 : i32
    %c0_i32_1 = arith.constant 0 : i32
    return %c0_i32, %c0_i32_0 : i32, i32
  }
  func.func @transform_11(%arg0: i32) -> (i32, i32) {
    %c0_i32 = arith.constant 0 : i32
    %c0_i32_0 = arith.constant 0 : i32
    %c0_i32_1 = arith.constant 0 : i32
    return %c0_i32, %c0_i32_0 : i32, i32
  }
  func.func @transform_12(%arg0: i32) -> (i32, i32) {
    %c0_i32 = arith.constant 0 : i32
    %c0_i32_0 = arith.constant 0 : i32
    %c0_i32_1 = arith.constant 0 : i32
    return %c0_i32, %c0_i32_0 : i32, i32
  }
  func.func @transform_13(%arg0: i32) -> (i32, i32) {
    %c0_i32 = arith.constant 0 : i32
    %c0_i32_0 = arith.constant 0 : i32
    %c0_i32_1 = arith.constant 0 : i32
    return %c0_i32, %c0_i32_0 : i32, i32
  }
  func.func @transform_14(%arg0: i32) -> (i32, i32, i32) {
    %c0_i32 = arith.constant 0 : i32
    %c0_i32_0 = arith.constant 0 : i32
    %c0_i32_1 = arith.constant 0 : i32
    return %arg0, %c0_i32, %c0_i32_0 : i32, i32, i32
  }
}

</mosaic_0001>

<bundles_post_ra>
// kernel: multi_head_attention.1
= control target key start
LH: loop header
LB: loop body
LE: loop exit
PB: predicated region body
PF: predicated region fallthrough
CT: control target
= control target key end

     0   :  { %v1889_v1 = vmov 0.0   ;;  %vm1890_vm0 = vmmov 0   ;;  %s2358_s0 = inlined_call_operand.vmem [shape: f32[2,8,128], index: 0, kind: input, shape index: {}]   ;;  %s2359_s1 = inlined_call_operand.vmem [shape: f32[2,8,128], index: 1, kind: input, shape index: {}]   ;;  %s2360_s2 = inlined_call_operand.vmem [shape: f32[2,8,128], index: 2, kind: input, shape index: {}]   ;;  %s2361_s3 = inlined_call_operand.vmem [shape: bf16[2,8,8], index: 3, kind: input, shape index: {}]   ;;  %s2362_s4 = inlined_call_operand.vmem [shape: bf16[128,128], index: 4, kind: input, shape index: {}]   ;;  %s2363_s5 = inlined_call_operand.vmem [shape: f32[1,128], index: 5, kind: input, shape index: {}]   ;;  %s2364_s6 = inlined_call_operand.vmem [shape: bf16[128,128], index: 6, kind: input, shape index: {}]   ;;  %s2365_s7 = inlined_call_operand.vmem [shape: f32[1,128], index: 7, kind: input, shape index: {}]   ;;  %s2366_s8 = inlined_call_operand.vmem [shape: bf16[128,128], index: 8, kind: input, shape index: {}]   ;;  %s2367_s9 = inlined_call_operand.vmem [shape: f32[1,128], index: 9, kind: input, shape index: {}]   ;;  %s2368_s10 = inlined_call_operand.vmem [shape: bf16[128,128], index: 10, kind: input, shape index: {}]   ;;  %s2369_s11 = inlined_call_operand.vmem [shape: f32[1,128], index: 11, kind: input, shape index: {}]   ;;  %s2370_s12 = inlined_call_operand.vmem [shape: f32[1,128], index: 12, kind: input, shape index: {}]   ;;  %s2371_s13 = inlined_call_operand.vmem [shape: f32[1,128], index: 13, kind: input, shape index: {}]   ;;  %s2372_s14 = inlined_call_operand.hbm [shape: f32[2,8,128], index: 14, kind: output, shape index: {}]  }
   0x1   :  { %v1799_v0 = vld [vmem:[%s2364_s6 + $0x38] sm:$0xff]   ;;  %1635 = vmatprep.subr.bf16.mxu1 %v1889_v1  ;;  %1615 = vmatprep.subr.bf16.mxu0 %v1889_v1  ;;  %v1801_v3 = vld [vmem:[%s2364_s6 + $0x30] sm:$0xff]   ;;  %v1803_v5 = vld [vmem:[%s2364_s6 + $0x28] sm:$0xff]  }
   0x2   :  { %v1800_v2 = vld [vmem:[%s2362_s4 + $0x38] sm:$0xff]   ;;  %1636 = vmatpush3.bf16.msra.mxu1 %v1799_v0  ;;  %1651 = vmatprep.mubr.msk.bf16.mxu1 %vm1890_vm0, %v1889_v1  ;;  %v1802_v4 = vld [vmem:[%s2362_s4 + $0x30] sm:$0xff]   ;;  %v1804_v6 = vld [vmem:[%s2362_s4 + $0x28] sm:$0xff]  }
   0x3   :  { %1616 = vmatpush3.bf16.msra.mxu0 %v1800_v2  ;;  %1637 = vmatprep.subr.bf16.mxu1 %v1889_v1  ;;  %v1805_v7 = vld [vmem:[%s2364_s6 + $0x20] sm:$0xff]   ;;  %v1807_v9 = vld [vmem:[%s2364_s6 + $0x18] sm:$0xff]   ;;  %v1809_v11 = vld [vmem:[%s2364_s6 + $0x10] sm:$0xff]  }
   0x4   :  { %1617 = vmatprep.subr.bf16.mxu0 %v1889_v1  ;;  %1631 = vmatprep.mubr.msk.bf16.mxu0 %vm1890_vm0, %v1889_v1  ;;  %v1806_v8 = vld [vmem:[%s2362_s4 + $0x20] sm:$0xff]   ;;  %v1808_v10 = vld [vmem:[%s2362_s4 + $0x18] sm:$0xff]   ;;  %v1810_v12 = vld [vmem:[%s2362_s4 + $0x10] sm:$0xff]  }
   0x5   :  { %v1811_v13 = vld [vmem:[%s2364_s6 + $0x8] sm:$0xff]   ;;  %v1813_v15 = vld [vmem:[%s2364_s6] sm:$0xff]  }
   0x6   :  { %1638 = vmatpush3.bf16.msra.mxu1 %v1801_v3  ;;  %v1812_v14 = vld [vmem:[%s2362_s4 + $0x8] sm:$0xff]   ;;  %v52_v16 = vld [vmem:[%s2359_s1] sm:$0xff] }
   0x7   :  { %1618 = vmatpush3.bf16.msra.mxu0 %v1802_v4  ;;  %1639 = vmatprep.subr.bf16.mxu1 %v1889_v1  ;;  %v53_v17 = vld [vmem:[%s2359_s1 + $0x8] sm:$0xff]  ;;  %v1814_v18 = vld [vmem:[%s2362_s4] sm:$0xff]  }
   0x8   :  { %1619 = vmatprep.subr.bf16.mxu0 %v1889_v1  ;;  %v2047_v19 = vld [vmem:[%s2358_s0] sm:$0xff]  ;;  %v2052_v20 = vld [vmem:[%s2358_s0 + $0x8] sm:$0xff]  ;;  %v54_v21 = vpack.c.bf16 %v53_v17, %v52_v16 }
   0x9   :  { %v51_v22 = vpack.c.bf16 %v2052_v20, %v2047_v19 }
   0xa   :  { %1640 = vmatpush3.bf16.msra.mxu1 %v1803_v5 }
   0xb   :  { %1620 = vmatpush3.bf16.msra.mxu0 %v1804_v6  ;;  %1641 = vmatprep.subr.bf16.mxu1 %v1889_v1 }
   0xc   :  { %1621 = vmatprep.subr.bf16.mxu0 %v1889_v1 }
   0xe   :  { %1642 = vmatpush3.bf16.msra.mxu1 %v1805_v7 }
   0xf   :  { %1622 = vmatpush3.bf16.msra.mxu0 %v1806_v8  ;;  %1643 = vmatprep.subr.bf16.mxu1 %v1889_v1 }
  0x10   :  { %1623 = vmatprep.subr.bf16.mxu0 %v1889_v1 }
  0x12   :  { %1644 = vmatpush3.bf16.msra.mxu1 %v1807_v9 }
  0x13   :  { %1624 = vmatpush3.bf16.msra.mxu0 %v1808_v10  ;;  %1645 = vmatprep.subr.bf16.mxu1 %v1889_v1 }
  0x14   :  { %1625 = vmatprep.subr.bf16.mxu0 %v1889_v1 }
  0x16   :  { %1646 = vmatpush3.bf16.msra.mxu1 %v1809_v11 }
  0x17   :  { %1626 = vmatpush3.bf16.msra.mxu0 %v1810_v12  ;;  %1647 = vmatprep.subr.bf16.mxu1 %v1889_v1 }
  0x18   :  { %1627 = vmatprep.subr.bf16.mxu0 %v1889_v1 }
  0x1a   :  { %1648 = vmatpush3.bf16.msra.mxu1 %v1811_v13 }
  0x1b   :  { %1628 = vmatpush3.bf16.msra.mxu0 %v1812_v14  ;;  %1649 = vmatprep.subr.bf16.mxu1 %v1889_v1 }
  0x1c   :  { %1629 = vmatprep.subr.bf16.mxu0 %v1889_v1 }
  0x1e   :  { %1650 = vmatpush3.bf16.msra.mxu1 %v1813_v15 }
  0x1f   :  { %19 = vsyncpa [#allocation4], 0  ;;  %1630 = vmatpush3.bf16.msra.mxu0 %v1814_v18  ;;  %v1815_v23 = vld [vmem:[%s2366_s8 + $0x38] sm:$0xff]   ;;  %1675 = vmatprep.subr.bf16.mxu1 %v1889_v1  ;;  %v1816_v24 = vld [vmem:[%s2366_s8 + $0x30] sm:$0xff]   ;;  %vm401_vm1 = vcmask 261120   ;;  %vm448_vm2 = vcmask 64512  }
  0x20   :  { %1655 = vmatprep.subr.bf16.mxu0 %v1889_v1  ;;  %v1817_v25 = vld [vmem:[%s2366_s8 + $0x28] sm:$0xff]   ;;  %v1818_v26 = vld [vmem:[%s2366_s8 + $0x20] sm:$0xff]   ;;  %v1819_v27 = vld [vmem:[%s2366_s8 + $0x18] sm:$0xff]   ;;  %vm464_vm3 = vcmask 1043456   ;;  %vm626_vm4 = vcmask 523520   ;;  %vm742_vm5 = vcmask 785920  }
  0x21   :  { %1652 = vmatmul.mubr.bf16.vlgmr.msra.gmra.mxu1 %v54_v21  ;;  %v1820_v28 = vld [vmem:[%s2366_s8 + $0x10] sm:$0xff]   ;;  %v1821_v29 = vld [vmem:[%s2366_s8 + $0x8] sm:$0xff]   ;;  %v1822_v30 = vld [vmem:[%s2366_s8] sm:$0xff]   ;;  %vm858_vm6 = vcmask 1048320  }
  0x22   :  { %1632 = vmatmul.mubr.bf16.vlgmr.msra.gmra.mxu0 %v51_v22  ;;  %1677 = vmatprep.mubr.msk.bf16.mxu1 %vm1890_vm0, %v1889_v1  ;;  %v55_v31 = vld [vmem:[%s2360_s2] sm:$0xff]  ;;  %v56_v32 = vld [vmem:[%s2360_s2 + $0x8] sm:$0xff]  ;;  %s1891_s2 = smov 96  }
  0x23   :  { %1656 = vmatpush3.bf16.msra.mxu0 %v1815_v23  ;;  %1671 = vmatprep.mubr.msk.bf16.mxu0 %vm1890_vm0, %v1889_v1  ;;  %v57_v33 = vpack.c.bf16 %v56_v32, %v55_v31  ;;  %v1492_v34 = vld [vmem:[%s2363_s5] ss:$0 sm:$0xff]  ;;  %s1894_s5 = smov [#allocation3]  }
  0x24   :  { %1657 = vmatprep.subr.bf16.mxu0 %v1889_v1  ;;  %v1501_v37 = vld [vmem:[%s2365_s7] ss:$0 sm:$0xff]  ;;  %s1481_s7 = sshll.u32 %s1894_s5, 4  ;;  %s1482_s7 = int_to_ptr.vmem [resolvable:$true] %s1481_s7 }
  0x25   :  { %v1510_v56 = vld [vmem:[%s2367_s9] ss:$0 sm:$0xff]  ;;  %s1893_s9 = smov 32   ;;  %s1867_s6 = scalar_lea.vmem %s1482_s7, 256 }
  0x26   :  { %v2146_v0 = vld [vmem:[%s2361_s3] sm:$0xff]   ;;  %s1892_s3 = smov 64   ;;  %p1868_p0 = scmp.ne.s32.totalorder %s1482_s7, %s1867_s6 }
  0x27   :  { %1658 = vmatpush3.bf16.msra.mxu0 %v1816_v24  ;;  %v2149_v2 = vunpack.c.l.bf16 %v2146_v0  ;;  %p1872_p1 = scmp.lt.s32.totalorder %s1482_s7, %s1482_s7  ;;  %p1873_p2 = scmp.lt.s32.totalorder %s1867_s6, %s1867_s6 }
  0x28   :  { %1659 = vmatprep.subr.bf16.mxu0 %v1889_v1 }
  0x29   :  { %p1874_p3 = por %p1873_p2, %p1872_p1 }
  0x2b   :  { %1660 = vmatpush3.bf16.msra.mxu0 %v1817_v25  ;;  %p1875_p4 = pnand %p1874_p3, %p1868_p0 }
  0x2c   :  { %1661 = vmatprep.subr.bf16.mxu0 %v1889_v1 }
  0x2f   :  { %1662 = vmatpush3.bf16.msra.mxu0 %v1818_v26 }
  0x30   :  { %1663 = vmatprep.subr.bf16.mxu0 %v1889_v1 }
  0x33   :  { %1664 = vmatpush3.bf16.msra.mxu0 %v1819_v27 }
  0x34   :  { %1665 = vmatprep.subr.bf16.mxu0 %v1889_v1 }
  0x37   :  { %1666 = vmatpush3.bf16.msra.mxu0 %v1820_v28 }
  0x38   :  { %1667 = vmatprep.subr.bf16.mxu0 %v1889_v1 }
  0x3b   :  { %1668 = vmatpush3.bf16.msra.mxu0 %v1821_v29 }
  0x3c   :  { %1669 = vmatprep.subr.bf16.mxu0 %v1889_v1 }
  0x3f   :  { %1670 = vmatpush3.bf16.msra.mxu0 %v1822_v30 }
  0x40   :  { %1723 = vmatprep.subr.bf16.mxu0 %v1889_v1 }
  0x42   :  { %1672 = vmatmul.mubr.bf16.vlgmr.msra.gmra.mxu0 %v57_v33 }
  0x43   :  { %1725 = vmatprep.mubr.msk.bf16.mxu0 %vm1890_vm0, %v1889_v1 }
  0xe1   :  { %v275_v35 = vpop.f32.mrf.mxu1 }
  0xe2   :  { %v163_v36 = vpop.f32.mrf.mxu0  ;;  %v276_v42 = vadd.f32 %v1501_v37, %v275_v35 }
  0xe3   :  { %v164_v38 = vadd.f32 %v1492_v34, %v163_v36  ;;  %v1653_v39 = vpop.f32.mrf.mxu1 }
  0xe4   :  { %v1633_v40 = vpop.f32.mrf.mxu0 }
  0xe5   :  { %v278_v41 = vpop.f32.mrf.mxu1  ;;  %v394_v45 = vmul.f32 0.17677669, %v164_v38 }
  0xe6   :  { %v279_v43 = vadd.f32 %v1501_v37, %v278_v41  ;;  %v166_v44 = vpop.f32.mrf.mxu0 }
  0xe7   :  { %v167_v46 = vadd.f32 %v1492_v34, %v166_v44  ;;  %v1654_v47 = vpop.f32.mrf.mxu1 }
  0xe8   :  { %v2110_v48 = vpack.c.bf16 %v279_v43, %v276_v42  ;;  %v1634_v49 = vpop.f32.mrf.mxu0 }
  0xe9   :  { %v395_v50 = vmul.f32 0.17677669, %v167_v46 }
  0xea   :  { %513 = vrot.lane.b32.xlu1 %v2110_v48, %s1891_s2  ;;  %v406_v51 = vsel %vm401_vm1, %v2110_v48, 0  ;;  %v2117_v52 = vrot.slane %v2110_v48, 4 }
  0xeb   :  { %v2119_v53 = vpack.c.bf16 %v395_v50, %v394_v45  ;;  %1676 = vmatpush3.bf16.xpose.msra.mxu1 %v406_v51 }
  0xec   :  { %v869_v54 = vsel %vm401_vm1, %v2117_v52, 0  ;;  %1681 = vmatprep.subr.bf16.mxu1 %v1889_v1 }
  0xed   :  { %1724 = vmatpush3.bf16.xpose.msra.mxu0 %v869_v54  ;;  %v2130_v55 = vrot.slane %v2119_v53, 4 }
  0xee   :  { %510 = vrot.lane.b32.xlu1 %v2119_v53, %s1891_s2  ;;  %1735 = vmatprep.subr.bf16.mxu0 %v1889_v1 }
  0xf2   :  { %1678 = vmatmul.mubr.msk.bf16.vlgmr.msra.gmra.mxu1 %vm401_vm1, %v2119_v53 }
  0xf3   :  { %1683 = vmatprep.mubr.msk.bf16.mxu1 %vm1890_vm0, %v1889_v1 }
  0xf4   :  { %1726 = vmatmul.mubr.msk.bf16.vlgmr.msra.gmra.mxu0 %vm401_vm1, %v2130_v55 }
  0xf5   :  { %1737 = vmatprep.mubr.msk.bf16.mxu0 %vm1890_vm0, %v1889_v1 }
 0x102   :  { %v387_v57 = vpop.f32.mrf.mxu0 }
 0x103   :  { %v388_v59 = vadd.f32 %v1510_v56, %v387_v57 }
 0x104   :  { %v1673_v58 = vpop.f32.mrf.mxu0 }
 0x106   :  { %v390_v60 = vpop.f32.mrf.mxu0 }
 0x107   :  { %v391_v61 = vadd.f32 %v1510_v56, %v390_v60 }
 0x108   :  { %v1674_v62 = vpop.f32.mrf.mxu0 }
 0x109   :  { %v2141_v63 = vpack.c.bf16 %v391_v61, %v388_v59 }
 0x10b   :  { %v466_v18 = vsel %vm464_vm3, %v2141_v63, 0 }
 0x10c   :  { %1682 = vmatpush3.bf16.msra.mxu1 %v466_v18 }
 0x10d   :  { %1687 = vmatprep.subr.bf16.mxu1 %v1889_v1 }
 0x15c   :  { %v514_v24 = vpop.permute.xlu1 %513 }
 0x15d   :  { %v519_v26 = vsel %vm401_vm1, %v514_v24, 0 }
 0x160   :  { %v511_v27 = vpop.permute.xlu1 %510 }
 0x1b2   :  { %v442_v3 = vpop.f32.mrf.mxu1 }
 0x1b3   :  { %v443_v4 = vadd.f32 %v442_v3, %v2149_v2 }
 0x1b4   :  { %v1679_v5 = vpop.f32.mrf.mxu1  ;;  %v2152_v6 = vpop.f32.mrf.mxu0 }
 0x1b5   :  { %v449_v7 = vsel %vm448_vm2, %v443_v4, -inf }
 0x1b6   :  { %450 = vmax.xlane.f32.xlu0 %v449_v7  ;;  %v445_v8 = vpop.f32.mrf.mxu1  ;;  %v1727_v9 = vpop.f32.mrf.mxu0 }
 0x1b7   :  { %v2198_v9 = vunpack.c.h.bf16 %v2146_v0 }
 0x1b8   :  { %v1680_v10 = vpop.f32.mrf.mxu1  ;;  %v908_v11 = vpop.f32.mrf.mxu0 }
 0x1b9   :  { %v2202_v10 = vadd.f32 %v2152_v6, %v2198_v9 }
 0x1ba   :  { %v1728_v12 = vpop.f32.mrf.mxu0 }
 0x1bb   :  { %v911_v11 = vsel %vm448_vm2, %v2202_v10, -inf }
 0x23f   :  { %v451_v13 = vpop.xlane.xlu0 %450 }
 0x240   :  { %v452_v14 = vsub.f32 %v443_v4, %v451_v13 }
 0x242   :  { %v453_v15 = vmul.f32 1.442695, %v452_v14 }
 0x244   :  { %1831 = vpow2.f32 %v453_v15 }
 0x251   :  { %v1832_v16 = vpop.eup %1831 }
 0x252   :  { %v455_v17 = vsel %vm448_vm2, %v1832_v16, 0.0 }
 0x253   :  { %456 = vadd.xlane.f32.xlu0 %v455_v17 }
 0x2dc   :  { %v457_v21 = vpop.xlane.xlu0 %456 }
 0x2dd   :  { %1833 = vrcp.f32 %v457_v21 }
 0x2ea   :  { %v1834_v22 = vpop.eup %1833 }
 0x2eb   :  { %v459_v23 = vmul.f32 %v1834_v22, %v1832_v16 }
 0x2ed   :  { %v460_v25 = vpack.c.bf16 %v459_v23, %v459_v23 }
 0x2ef   :  { %1684 = vmatmul.mubr.msk.bf16.vlgmr.msra.gmra.mxu1 %vm448_vm2, %v460_v25 }
 0x2f0   :  { %1688 = vmatpush3.bf16.xpose.msra.mxu1 %v519_v26  ;;  %1689 = vmatprep.mubr.msk.bf16.mxu1 %vm1890_vm0, %v1889_v1 }
 0x2f1   :  { %1693 = vmatprep.subr.bf16.mxu1 %v1889_v1 }
 0x2f7   :  { %1690 = vmatmul.mubr.msk.bf16.vlgmr.msra.gmra.mxu1 %vm401_vm1, %v511_v27 }
 0x2f8   :  { %1695 = vmatprep.mubr.msk.bf16.mxu1 %vm1890_vm0, %v1889_v1 }
 0x3af   :  { %v502_v28 = vpop.f32.mrf.mxu1 }
 0x3b0   :  { %508 = vst.msk [vmem:[#allocation2] sm:$0xff] %vm401_vm1, %v502_v28 }
 0x3b1   :  { %v1685_v29 = vpop.f32.mrf.mxu1 }
 0x3b3   :  { %v505_v30 = vpop.f32.mrf.mxu1 }
 0x3b5   :  { %v1686_v31 = vpop.f32.mrf.mxu1 }
 0x3b7   :  { %v555_v32 = vpop.f32.mrf.mxu1 }
 0x3b8   :  { %v556_v33 = vadd.f32 %v555_v32, %v2149_v2 }
 0x3b9   :  { %v1691_v34 = vpop.f32.mrf.mxu1 }
 0x3ba   :  { %v561_v35 = vsel %vm448_vm2, %v556_v33, -inf }
 0x3bb   :  { %562 = vmax.xlane.f32.xlu0 %v561_v35  ;;  %v558_v36 = vpop.f32.mrf.mxu1 }
 0x3bd   :  { %v1692_v37 = vpop.f32.mrf.mxu1 }
 0x3d1   :  { %574 = vrot.lane.b32.xlu0 %v2141_v63, %s1891_s2 }
 0x3d5   :  { %630 = vrot.lane.b32.xlu0 %v2110_v48, %s1892_s3 }
 0x3d9   :  { %628 = vrot.lane.b32.xlu0 %v2119_v53, %s1892_s3 }
 0x444   :  { %v563_v38 = vpop.xlane.xlu0 %562 }
 0x445   :  { %v564_v39 = vsub.f32 %v556_v33, %v563_v38 }
 0x447   :  { %v565_v40 = vmul.f32 1.442695, %v564_v39 }
 0x448   :  { %v575_v41 = vpop.permute.xlu0 %574 }
 0x449   :  { %1835 = vpow2.f32 %v565_v40  ;;  %v580_v42 = vsel %vm464_vm3, %v575_v41, 0 }
 0x44a   :  { %1694 = vmatpush3.bf16.msra.mxu1 %v580_v42 }
 0x44b   :  { %1699 = vmatprep.subr.bf16.mxu1 %v1889_v1 }
 0x44c   :  { %v631_v49 = vpop.permute.xlu0 %630 }
 0x44d   :  { %v636_v51 = vsel %vm401_vm1, %v631_v49, 0 }
 0x450   :  { %v629_v56 = vpop.permute.xlu0 %628 }
 0x456   :  { %v1836_v43 = vpop.eup %1835 }
 0x457   :  { %v567_v44 = vsel %vm448_vm2, %v1836_v43, 0.0 }
 0x458   :  { %568 = vadd.xlane.f32.xlu1 %v567_v44 }
 0x469   :  { %690 = vrot.lane.b32.xlu1 %v2141_v63, %s1892_s3 }
 0x4e1   :  { %v569_v45 = vpop.xlane.xlu1 %568 }
 0x4e2   :  { %1837 = vrcp.f32 %v569_v45 }
 0x4e5   :  { %v691_v54 = vpop.permute.xlu1 %690 }
 0x4e6   :  { %v696_v57 = vsel %vm464_vm3, %v691_v54, 0 }
 0x4ef   :  { %v1838_v46 = vpop.eup %1837 }
 0x4f0   :  { %v571_v47 = vmul.f32 %v1838_v46, %v1836_v43 }
 0x4f2   :  { %v572_v50 = vpack.c.bf16 %v571_v47, %v571_v47 }
 0x4f4   :  { %1696 = vmatmul.mubr.msk.bf16.vlgmr.msra.gmra.mxu1 %vm448_vm2, %v572_v50 }
 0x4f5   :  { %1700 = vmatpush3.bf16.xpose.msra.mxu1 %v636_v51  ;;  %1701 = vmatprep.mubr.msk.bf16.mxu1 %vm1890_vm0, %v1889_v1 }
 0x4f6   :  { %1705 = vmatprep.subr.bf16.mxu1 %v1889_v1 }
 0x4fc   :  { %1702 = vmatmul.mubr.msk.bf16.vlgmr.msra.gmra.mxu1 %vm401_vm1, %v629_v56 }
 0x4fd   :  { %1706 = vmatpush3.bf16.msra.mxu1 %v696_v57  ;;  %1707 = vmatprep.mubr.msk.bf16.mxu1 %vm1890_vm0, %v1889_v1 }
 0x4fe   :  { %1711 = vmatprep.subr.bf16.mxu1 %v1889_v1 }
 0x5b4   :  { %v2191_v58 = vpop.f32.mrf.mxu1 }
 0x5b6   :  { %v1697_v59 = vpop.f32.mrf.mxu1 }
 0x5b8   :  { %v619_v60 = vpop.f32.mrf.mxu1 }
 0x5ba   :  { %v1698_v61 = vpop.f32.mrf.mxu1 }
 0x5bc   :  { %v672_v62 = vpop.f32.mrf.mxu1 }
 0x5bd   :  { %v673_v3 = vadd.f32 %v672_v62, %v2149_v2 }
 0x5be   :  { %v1703_v4 = vpop.f32.mrf.mxu1 }
 0x5bf   :  { %v678_v5 = vsel %vm448_vm2, %v673_v3, -inf }
 0x5c0   :  { %679 = vmax.xlane.f32.xlu0 %v678_v5  ;;  %v675_v7 = vpop.f32.mrf.mxu1 }
 0x5c2   :  { %v1704_v8 = vpop.f32.mrf.mxu1 }
 0x5d6   :  { %973 = vrot.lane.b32.xlu0 %v2117_v52, %s1891_s2 }
 0x5f5   :  { %912 = vmax.xlane.f32.xlu0 %v911_v11 }
 0x649   :  { %v680_v12 = vpop.xlane.xlu0 %679 }
 0x64a   :  { %v681_v13 = vsub.f32 %v673_v3, %v680_v12 }
 0x64c   :  { %v682_v14 = vmul.f32 1.442695, %v681_v13 }
 0x64d   :  { %v974_v15 = vpop.permute.xlu0 %973 }
 0x64e   :  { %1839 = vpow2.f32 %v682_v14  ;;  %v979_v16 = vsel %vm401_vm1, %v974_v15, 0 }
 0x64f   :  { %1736 = vmatpush3.bf16.xpose.msra.mxu0 %v979_v16 }
 0x650   :  { %1747 = vmatprep.subr.bf16.mxu0 %v1889_v1 }
 0x65b   :  { %v1840_v0 = vpop.eup %1839 }
 0x65c   :  { %v684_v17 = vsel %vm448_vm2, %v1840_v0, 0.0 }
 0x65d   :  { %685 = vadd.xlane.f32.xlu1 %v684_v17 }
 0x66e   :  { %746 = vrot.lane.b32.xlu1 %v2110_v48, %s1893_s9 }
 0x672   :  { %744 = vrot.lane.b32.xlu1 %v2119_v53, %s1893_s9 }
 0x676   :  { %971 = vrot.lane.b32.xlu1 %v2130_v55, %s1891_s2 }
 0x67a   :  { %1088 = vrot.lane.b32.xlu1 %v2117_v52, %s1892_s3 }
 0x67e   :  { %1086 = vrot.lane.b32.xlu1 %v2130_v55, %s1892_s3  ;;  %v913_v29 = vpop.xlane.xlu0 %912 }
 0x67f   :  { %v914_v33 = vsub.f32 %v2202_v10, %v913_v29 }
 0x681   :  { %v915_v38 = vmul.f32 1.442695, %v914_v33 }
 0x682   :  { %1203 = vrot.lane.b32.xlu1 %v2117_v52, %s1893_s9 }
 0x686   :  { %1201 = vrot.lane.b32.xlu1 %v2130_v55, %s1893_s9 }
 0x6e6   :  { %v686_v6 = vpop.xlane.xlu1 %685 }
 0x6e7   :  { %1841 = vrcp.f32 %v686_v6 }
 0x6e8   :  { %1843 = vpow2.f32 %v915_v38 }
 0x6ea   :  { %v747_v48 = vpop.permute.xlu1 %746 }
 0x6eb   :  { %v752_v52 = vsel %vm401_vm1, %v747_v48, 0 }
 0x6ee   :  { %v745_v18 = vpop.permute.xlu1 %744 }
 0x6f2   :  { %v972_v53 = vpop.permute.xlu1 %971 }
 0x6f3   :  { %1738 = vmatmul.mubr.msk.bf16.vlgmr.msra.gmra.mxu0 %vm401_vm1, %v972_v53 }
 0x6f4   :  { %v1842_v21 = vpop.eup %1841  ;;  %1749 = vmatprep.mubr.msk.bf16.mxu0 %vm1890_vm0, %v1889_v1 }
 0x6f5   :  { %v688_v22 = vmul.f32 %v1842_v21, %v1840_v0 }
 0x6f6   :  { %v1089_v23 = vpop.permute.xlu1 %1088 }
 0x6f7   :  { %v1094_v24 = vsel %vm401_vm1, %v1089_v23, 0  ;;  %v689_v25 = vpack.c.bf16 %v688_v22, %v688_v22 }
 0x6f8   :  { %1748 = vmatpush3.bf16.xpose.msra.mxu0 %v1094_v24 }
 0x6f9   :  { %1708 = vmatmul.mubr.msk.bf16.vlgmr.msra.gmra.mxu1 %vm448_vm2, %v689_v25  ;;  %1759 = vmatprep.subr.bf16.mxu0 %v1889_v1  ;;  %v923_v25 = vrot.slane %v2141_v63, 4 }
 0x6fa   :  { %1712 = vmatpush3.bf16.xpose.msra.mxu1 %v752_v52  ;;  %v1087_v55 = vpop.permute.xlu1 %1086  ;;  %1713 = vmatprep.mubr.msk.bf16.mxu1 %vm1890_vm0, %v1889_v1 }
 0x6fb   :  { %1717 = vmatprep.subr.bf16.mxu1 %v1889_v1 }
 0x6fe   :  { %v1204_v26 = vpop.permute.xlu1 %1203 }
 0x6ff   :  { %v1209_v27 = vsel %vm401_vm1, %v1204_v26, 0  ;;  %1750 = vmatmul.mubr.msk.bf16.vlgmr.msra.gmra.mxu0 %vm401_vm1, %v1087_v55 }
 0x700   :  { %1760 = vmatpush3.bf16.xpose.msra.mxu0 %v1209_v27  ;;  %1761 = vmatprep.mubr.msk.bf16.mxu0 %vm1890_vm0, %v1889_v1 }
 0x701   :  { %1714 = vmatmul.mubr.msk.bf16.vlgmr.msra.gmra.mxu1 %vm401_vm1, %v745_v18  ;;  %1771 = vmatprep.subr.bf16.mxu0 %v1889_v1 }
 0x702   :  { %1719 = vmatprep.mubr.msk.bf16.mxu1 %vm1890_vm0, %v1889_v1  ;;  %v1202_v28 = vpop.permute.xlu1 %1201 }
 0x707   :  { %1762 = vmatmul.mubr.msk.bf16.vlgmr.msra.gmra.mxu0 %vm401_vm1, %v1202_v28 }
 0x708   :  { %1787 = vmatprep.mubr.msk.bf16.mxu0 %vm1890_vm0, %v1889_v1 }
 0x7b3   :  { %v1015_v30 = vpop.f32.mrf.mxu0 }
 0x7b4   :  { %v1016_v31 = vadd.f32 %v1015_v30, %v2198_v9 }
 0x7b5   :  { %v1739_v32 = vpop.f32.mrf.mxu0 }
 0x7b6   :  { %v1021_v34 = vsel %vm448_vm2, %v1016_v31, -inf }
 0x7b7   :  { %1022 = vmax.xlane.f32.xlu0 %v1021_v34  ;;  %v1018_v35 = vpop.f32.mrf.mxu0 }
 0x7b9   :  { %v2247_v36 = vpop.f32.mrf.mxu1  ;;  %v1740_v37 = vpop.f32.mrf.mxu0 }
 0x7bb   :  { %v1709_v39 = vpop.f32.mrf.mxu1 }
 0x7bd   :  { %v735_v40 = vpop.f32.mrf.mxu1 }
 0x7bf   :  { %v1710_v41 = vpop.f32.mrf.mxu1  ;;  %v1130_v42 = vpop.f32.mrf.mxu0 }
 0x7c0   :  { %v1131_v49 = vadd.f32 %v1130_v42, %v2198_v9 }
 0x7c1   :  { %v788_v43 = vpop.f32.mrf.mxu1  ;;  %v1751_v44 = vpop.f32.mrf.mxu0 }
 0x7c2   :  { %v789_v45 = vadd.f32 %v788_v43, %v2149_v2  ;;  %v1136_v60 = vsel %vm448_vm2, %v1131_v49, -inf  ;;  %v2255_v2 = vpop.eup %1843 }
 0x7c3   :  { %v1715_v46 = vpop.f32.mrf.mxu1  ;;  %v1133_v47 = vpop.f32.mrf.mxu0  ;;  %v917_v5 = vsel %vm448_vm2, %v2255_v2, 0.0 }
 0x7c4   :  { %v794_v50 = vsel %vm448_vm2, %v789_v45, -inf }
 0x7c5   :  { %795 = vmax.xlane.f32.xlu1 %v794_v50  ;;  %v791_v51 = vpop.f32.mrf.mxu1  ;;  %v1752_v54 = vpop.f32.mrf.mxu0 }
 0x7c7   :  { %v1716_v56 = vpop.f32.mrf.mxu1  ;;  %v1245_v57 = vpop.f32.mrf.mxu0 }
 0x7c8   :  { %v1246_v59 = vadd.f32 %v1245_v57, %v2198_v9  ;;  %v1823_v57 = vld [vmem:[%s2368_s10 + $0x38] sm:$0xff]  }
 0x7c9   :  { %1137 = vmax.xlane.f32.xlu1 %v1136_v60  ;;  %v1763_v61 = vpop.f32.mrf.mxu0  ;;  %1772 = vmatpush3.bf16.msra.mxu0 %v1823_v57 }
 0x7ca   :  { %v1251_v62 = vsel %vm448_vm2, %v1246_v59, -inf  ;;  %1773 = vmatprep.subr.bf16.mxu0 %v1889_v1 }
 0x7cb   :  { %1252 = vmax.xlane.f32.xlu0 %v1251_v62  ;;  %v1248_v3 = vpop.f32.mrf.mxu0 }
 0x7cd   :  { %v1764_v4 = vpop.f32.mrf.mxu0 }
 0x7ce   :  { %v1826_v4 = vld [vmem:[%s2368_s10 + $0x20] sm:$0xff]  }
 0x7cf   :  { %918 = vadd.xlane.f32.xlu0 %v917_v5 }
 0x840   :  { %v1023_v7 = vpop.xlane.xlu0 %1022 }
 0x841   :  { %v1024_v8 = vsub.f32 %v1016_v31, %v1023_v7 }
 0x843   :  { %v1025_v10 = vmul.f32 1.442695, %v1024_v8 }
 0x845   :  { %1845 = vpow2.f32 %v1025_v10  ;;  %v1827_v10 = vld [vmem:[%s2368_s10 + $0x18] sm:$0xff]  }
 0x84e   :  { %v796_v9 = vpop.xlane.xlu1 %795 }
 0x84f   :  { %v797_v11 = vsub.f32 %v789_v45, %v796_v9 }
 0x851   :  { %v798_v12 = vmul.f32 1.442695, %v797_v11  ;;  %v1828_v11 = vld [vmem:[%s2368_s10 + $0x10] sm:$0xff]  }
 0x852   :  { %v2259_v13 = vpop.eup %1845  ;;  %v1138_v14 = vpop.xlane.xlu1 %1137 }
 0x853   :  { %1847 = vpow2.f32 %v798_v12  ;;  %v1139_v15 = vsub.f32 %v1131_v49, %v1138_v14  ;;  %v1027_v16 = vsel %vm448_vm2, %v2259_v13, 0.0 }
 0x854   :  { %1028 = vadd.xlane.f32.xlu1 %v1027_v16  ;;  %v1253_v0 = vpop.xlane.xlu0 %1252 }
 0x855   :  { %v1140_v17 = vmul.f32 1.442695, %v1139_v15  ;;  %v1254_v6 = vsub.f32 %v1246_v59, %v1253_v0  ;;  %v1824_v59 = vld [vmem:[%s2368_s10 + $0x30] sm:$0xff]   ;;  %v1829_v15 = vld [vmem:[%s2368_s10 + $0x8] sm:$0xff]   ;;  %v1830_v0 = vld [vmem:[%s2368_s10] sm:$0xff]  }
 0x856   :  { %1774 = vmatpush3.bf16.msra.mxu0 %v1824_v59 }
 0x857   :  { %1849 = vpow2.f32 %v1140_v17  ;;  %v1255_v48 = vmul.f32 1.442695, %v1254_v6  ;;  %1775 = vmatprep.subr.bf16.mxu0 %v1889_v1 }
 0x858   :  { %v919_v26 = vpop.xlane.xlu0 %918 }
 0x859   :  { %1851 = vpow2.f32 %v1255_v48 }
 0x860   :  { %v1848_v18 = vpop.eup %1847 }
 0x861   :  { %v800_v53 = vsel %vm448_vm2, %v1848_v18, 0.0 }
 0x862   :  { %801 = vadd.xlane.f32.xlu1 %v800_v53 }
 0x864   :  { %v1850_v21 = vpop.eup %1849 }
 0x865   :  { %v1142_v22 = vsel %vm448_vm2, %v1850_v21, 0.0 }
 0x866   :  { %v2265_v23 = vpop.eup %1851  ;;  %1143 = vadd.xlane.f32.xlu0 %v1142_v22 }
 0x867   :  { %v1257_v24 = vsel %vm448_vm2, %v2265_v23, 0.0 }
 0x86a   :  { %1258 = vadd.xlane.f32.xlu0 %v1257_v24 }
 0x873   :  { %806 = vrot.lane.b32.xlu1 %v2141_v63, %s1893_s9 }
 0x877   :  { %1148 = vrot.lane.b32.xlu1 %v923_v25, %s1892_s3 }
 0x87b   :  { %1263 = vrot.lane.b32.xlu1 %v923_v25, %s1893_s9 }
 0x87f   :  { %623 = vrot.lane.b32.xlu1 %v2191_v58, %s1893_s9 }
 0x880   :  { %1033 = vrot.lane.b32.xlu0 %v923_v25, %s1891_s2 }
 0x883   :  { %739 = vrot.lane.b32.xlu1 %v2247_v36, %s1892_s3  ;;  %v928_v36 = vsel %vm464_vm3, %v923_v25, 0 }
 0x8dd   :  { %v1029_v52 = vpop.xlane.xlu1 %1028 }
 0x8eb   :  { %v802_v55 = vpop.xlane.xlu1 %801 }
 0x8ec   :  { %1853 = vrcp.f32 %v802_v55 }
 0x8ed   :  { %1855 = vrcp.f32 %v919_v26 }
 0x8ee   :  { %1857 = vrcp.f32 %v1029_v52 }
 0x8ef   :  { %v807_v27 = vpop.permute.xlu1 %806  ;;  %v1144_v29 = vpop.xlane.xlu0 %1143 }
 0x8f0   :  { %v812_v63 = vsel %vm464_vm3, %v807_v27, 0  ;;  %1859 = vrcp.f32 %v1144_v29 }
 0x8f1   :  { %1718 = vmatpush3.bf16.msra.mxu1 %v812_v63  ;;  %v1536_v63 = vld [vmem:[%s2369_s11] ss:$0 sm:$0xff] }
 0x8f2   :  { %1729 = vmatprep.subr.bf16.mxu1 %v1889_v1 }
 0x8f3   :  { %v1149_v28 = vpop.permute.xlu1 %1148  ;;  %v1259_v35 = vpop.xlane.xlu0 %1258 }
 0x8f4   :  { %1861 = vrcp.f32 %v1259_v35  ;;  %v1154_v46 = vsel %vm464_vm3, %v1149_v28, 0 }
 0x8f7   :  { %v1264_v30 = vpop.permute.xlu1 %1263  ;;  %v1034_v39 = vpop.permute.xlu0 %1033 }
 0x8f8   :  { %v1039_v42 = vsel %vm464_vm3, %v1034_v39, 0  ;;  %v1269_v51 = vsel %vm464_vm3, %v1264_v30, 0 }
 0x8f9   :  { %v1854_v58 = vpop.eup %1853 }
 0x8fa   :  { %v804_v31 = vmul.f32 %v1854_v58, %v1848_v18  ;;  %v1856_v34 = vpop.eup %1855 }
 0x8fb   :  { %v624_v32 = vpop.permute.xlu1 %623  ;;  %v921_v38 = vmul.f32 %v1856_v34, %v2255_v2  ;;  %v1858_v41 = vpop.eup %1857  ;;  %v1825_v2 = vld [vmem:[%s2368_s10 + $0x28] sm:$0xff]  }
 0x8fc   :  { %627 = vst.msk [vmem:[#allocation2] sm:$0xff] %vm626_vm4, %v624_v32  ;;  %v805_v33 = vpack.c.bf16 %v804_v31, %v804_v31  ;;  %v1031_v43 = vmul.f32 %v1858_v41, %v2259_v13  ;;  %1776 = vmatpush3.bf16.msra.mxu0 %v1825_v2 }
 0x8fd   :  { %v922_v40 = vpack.c.bf16 %v921_v38, %v921_v38  ;;  %v1860_v45 = vpop.eup %1859  ;;  %1777 = vmatprep.subr.bf16.mxu0 %v1889_v1 }
 0x8fe   :  { %1720 = vmatmul.mubr.msk.bf16.vlgmr.msra.gmra.mxu1 %vm448_vm2, %v805_v33  ;;  %v1032_v44 = vpack.c.bf16 %v1031_v43, %v1031_v43  ;;  %v1146_v47 = vmul.f32 %v1860_v45, %v1850_v21 }
 0x8ff   :  { %1730 = vmatpush3.bf16.msra.mxu1 %v928_v36  ;;  %v740_v37 = vpop.permute.xlu1 %739  ;;  %1731 = vmatprep.mubr.msk.bf16.mxu1 %vm1890_vm0, %v1889_v1 }
 0x900   :  { %743 = vst.msk [vmem:[#allocation2] sm:$0xff] %vm742_vm5, %v740_v37  ;;  %1741 = vmatprep.subr.bf16.mxu1 %v1889_v1  ;;  %v1147_v49 = vpack.c.bf16 %v1146_v47, %v1146_v47  ;;  %1778 = vmatpush3.bf16.msra.mxu0 %v1826_v4 }
 0x901   :  { %v1862_v50 = vpop.eup %1861  ;;  %1779 = vmatprep.subr.bf16.mxu0 %v1889_v1 }
 0x902   :  { %v1261_v54 = vmul.f32 %v1862_v50, %v2265_v23 }
 0x904   :  { %v1262_v56 = vpack.c.bf16 %v1261_v54, %v1261_v54  ;;  %1780 = vmatpush3.bf16.msra.mxu0 %v1827_v10 }
 0x905   :  { %1781 = vmatprep.subr.bf16.mxu0 %v1889_v1 }
 0x906   :  { %1732 = vmatmul.mubr.msk.bf16.vlgmr.msra.gmra.mxu1 %vm448_vm2, %v922_v40 }
 0x907   :  { %1742 = vmatpush3.bf16.msra.mxu1 %v1039_v42  ;;  %1743 = vmatprep.mubr.msk.bf16.mxu1 %vm1890_vm0, %v1889_v1 }
 0x908   :  { %1753 = vmatprep.subr.bf16.mxu1 %v1889_v1  ;;  %1782 = vmatpush3.bf16.msra.mxu0 %v1828_v11 }
 0x909   :  { %1783 = vmatprep.subr.bf16.mxu0 %v1889_v1 }
 0x90c   :  { %1784 = vmatpush3.bf16.msra.mxu0 %v1829_v15 }
 0x90d   :  { %1785 = vmatprep.subr.bf16.mxu0 %v1889_v1 }
 0x90e   :  { %1744 = vmatmul.mubr.msk.bf16.vlgmr.msra.gmra.mxu1 %vm448_vm2, %v1032_v44 }
 0x90f   :  { %1754 = vmatpush3.bf16.msra.mxu1 %v1154_v46  ;;  %1755 = vmatprep.mubr.msk.bf16.mxu1 %vm1890_vm0, %v1889_v1 }
 0x910   :  { %1765 = vmatprep.subr.bf16.mxu1 %v1889_v1  ;;  %1786 = vmatpush3.bf16.msra.mxu0 %v1830_v0 }
 0x916   :  { %1756 = vmatmul.mubr.msk.bf16.vlgmr.msra.gmra.mxu1 %vm448_vm2, %v1147_v49  ;;  %v1545_v49 = vld [vmem:[%s2370_s12] ss:$0 sm:$0xff] }
 0x917   :  { %1766 = vmatpush3.bf16.msra.mxu1 %v1269_v51  ;;  %1767 = vmatprep.mubr.msk.bf16.mxu1 %vm1890_vm0, %v1889_v1  ;;  %v1546_v51 = vld [vmem:[%s2371_s13] ss:$0 sm:$0xff] }
 0x91e   :  { %1768 = vmatmul.mubr.msk.bf16.vlgmr.msra.gmra.mxu1 %vm448_vm2, %v1262_v56 }
 0x9be   :  { %v848_v60 = vpop.f32.mrf.mxu1 }
 0x9bf   :  { %855 = vrot.lane.b32.xlu1 %v848_v60, %s1891_s2 }
 0x9c0   :  { %v1721_v61 = vpop.f32.mrf.mxu1 }
 0x9c2   :  { %v851_v62 = vpop.f32.mrf.mxu1 }
 0x9c4   :  { %v1722_v3 = vpop.f32.mrf.mxu1 }
 0x9c6   :  { %v964_v5 = vpop.f32.mrf.mxu1 }
 0x9c7   :  { %970 = vst.msk [vmem:[#allocation2 + $0x8] sm:$0xff] %vm401_vm1, %v964_v5 }
 0x9c8   :  { %v1733_v7 = vpop.f32.mrf.mxu1 }
 0x9ca   :  { %v967_v8 = vpop.f32.mrf.mxu1 }
 0x9cc   :  { %v1734_v9 = vpop.f32.mrf.mxu1 }
 0x9ce   :  { %v1075_v12 = vpop.f32.mrf.mxu1 }
 0x9cf   :  { %1082 = vrot.lane.b32.xlu0 %v1075_v12, %s1893_s9 }
 0x9d0   :  { %v1745_v13 = vpop.f32.mrf.mxu1 }
 0x9d2   :  { %v1078_v14 = vpop.f32.mrf.mxu1 }
 0x9d4   :  { %v1746_v16 = vpop.f32.mrf.mxu1 }
 0x9d6   :  { %v1190_v17 = vpop.f32.mrf.mxu1 }
 0x9d7   :  { %1197 = vrot.lane.b32.xlu0 %v1190_v17, %s1892_s3 }
 0x9d8   :  { %v1757_v6 = vpop.f32.mrf.mxu1 }
 0x9da   :  { %v1193_v48 = vpop.f32.mrf.mxu1 }
 0x9dc   :  { %v1758_v18 = vpop.f32.mrf.mxu1 }
 0x9de   :  { %v1305_v53 = vpop.f32.mrf.mxu1 }
 0x9df   :  { %1312 = vrot.lane.b32.xlu0 %v1305_v53, %s1891_s2 }
 0x9e0   :  { %v1769_v21 = vpop.f32.mrf.mxu1 }
 0x9e2   :  { %v1308_v22 = vpop.f32.mrf.mxu1 }
 0x9e4   :  { %v1770_v23 = vpop.f32.mrf.mxu1 }
 0xa31   :  { %v856_v24 = vpop.permute.xlu1 %855 }
 0xa32   :  { %859 = vst.msk [vmem:[#allocation2] sm:$0xff] %vm858_vm6, %v856_v24 }
 0xa39   :  { %v1316_v55 = vld [vmem:[#allocation2] sm:$0xff] }
 0xa41   :  { %v1083_v25 = vpop.permute.xlu0 %1082 }
 0xa42   :  { %1085 = vst.msk [vmem:[#allocation2 + $0x8] sm:$0xff] %vm626_vm4, %v1083_v25 }
 0xa49   :  { %v1198_v1 = vpop.permute.xlu0 %1197 }
 0xa4a   :  { %1200 = vst.msk [vmem:[#allocation2 + $0x8] sm:$0xff] %vm742_vm5, %v1198_v1 }
 0xa51   :  { %v1313_v52 = vpop.permute.xlu0 %1312 }
 0xa52   :  { %1315 = vst.msk [vmem:[#allocation2 + $0x8] sm:$0xff] %vm858_vm6, %v1313_v52 }
 0xa59   :  { %v1317_v26 = vld [vmem:[#allocation2 + $0x8] sm:$0xff] }
 0xa5a   :  { %v1318_v27 = vpack.c.bf16 %v1317_v26, %v1316_v55 }
 0xa5c   :  { %1788 = vmatmul.mubr.bf16.vlgmr.msra.gmra.mxu0 %v1318_v27 }
 0xb1c   :  { %v1424_v28 = vpop.f32.mrf.mxu0 }
 0xb1d   :  { %v1425_v29 = vadd.f32 %v1536_v63, %v1424_v28 }
 0xb1e   :  { %v1789_v30 = vpop.f32.mrf.mxu0 }
 0xb1f   :  { %v1431_v58 = vadd.f32 %v1425_v29, %v2047_v19 }
 0xb20   :  { %v1427_v31 = vpop.f32.mrf.mxu0 }
 0xb21   :  { %v1428_v32 = vadd.f32 %v1536_v63, %v1427_v31  ;;  %1433 = vadd.xlane.f32.xlu1 %v1431_v58 }
 0xb22   :  { %v1790_v33 = vpop.f32.mrf.mxu0 }
 0xb23   :  { %v1432_v34 = vadd.f32 %v1428_v32, %v2052_v20 }
 0xb25   :  { %1435 = vadd.xlane.f32.xlu0 %v1432_v34 }
 0xbaa   :  { %v1434_v35 = vpop.xlane.xlu1 %1433 }
 0xbab   :  { %v1438_v36 = vmul.f32 0.0078125, %v1434_v35 }
 0xbad   :  { %v1440_v37 = vsub.f32 %v1431_v58, %v1438_v36 }
 0xbae   :  { %v1436_v38 = vpop.xlane.xlu0 %1435 }
 0xbaf   :  { %v1439_v39 = vmul.f32 0.0078125, %v1436_v38  ;;  %v1442_v40 = vmul.f32 %v1440_v37, %v1440_v37 }
 0xbb1   :  { %v1441_v41 = vsub.f32 %v1432_v34, %v1439_v39  ;;  %1444 = vadd.xlane.f32.xlu0 %v1442_v40 }
 0xbb3   :  { %v1443_v42 = vmul.f32 %v1441_v41, %v1441_v41 }
 0xbb5   :  { %1446 = vadd.xlane.f32.xlu1 %v1443_v42 }
 0xc3a   :  { %v1445_v43 = vpop.xlane.xlu0 %1444 }
 0xc3b   :  { %v1448_v44 = vmul.f32 0.0078125, %v1445_v43 }
 0xc3d   :  { %v1450_v19 = vadd.f32 1e-05, %v1448_v44 }
 0xc3e   :  { %v1447_v45 = vpop.xlane.xlu1 %1446 }
 0xc3f   :  { %1863 = vrsqrt.f32 %v1450_v19  ;;  %v1449_v46 = vmul.f32 0.0078125, %v1447_v45 }
 0xc41   :  { %v1451_v47 = vadd.f32 1e-05, %v1449_v46 }
 0xc43   :  { %1865 = vrsqrt.f32 %v1451_v47 }
 0xc4c   :  { %v1864_v20 = vpop.eup %1863 }
 0xc4d   :  { %v1454_v50 = vmul.f32 %v1864_v20, %v1440_v37 }
 0xc4f   :  { %v1463_v54 = vmul.f32 %v1545_v49, %v1454_v50 }
 0xc50   :  { %v1866_v56 = vpop.eup %1865 }
 0xc51   :  { %v1455_v57 = vmul.f32 %v1866_v56, %v1441_v41  ;;  %v1472_v59 = vadd.f32 %v1546_v51, %v1463_v54 }
 0xc53   :  { %v1464_v60 = vmul.f32 %v1545_v49, %v1455_v57  ;;  %1474 = vst [vmem:[#allocation3] sm:$0xff] %v1472_v59 }
 0xc55   :  { %v1473_v61 = vadd.f32 %v1546_v51, %v1464_v60 }
 0xc57   :  { %1475 = vst [vmem:[#allocation3 + $0x8] sm:$0xff] %v1473_v61 }
 0xc58   :  { %1878 = shalt.err (!%p1875_p4)
}
 0xc59   :  { %s1895_s12 = smov 128   ;;  %s1896_s13 = smov 8  }
 0xc5a   :  { %1487 = dma.vmem_to_hbm [thread:$0]  %s1482_s7, 256, %s2372_s14, [#allocation4], %s1895_s12, %s1895_s12, %s1896_s13  }
 0xc5b   :  { %1887 = dma.done.wait [#allocation4], 256  }
 0xc5c   :  { %1888 = vsyncadd [#allocation4], 4294967040 }
 0xc5d   :  { %1491 = vsyncpa [#allocation4], 1 }

</bundles_post_ra>
